<compile_context>
chip_gen: v6e
topology: v6e:2x2x1
jax: 0.10.0
libtpu: 0.0.40
codegen_flags: <defaults>
</compile_context>

<pallas_src>
import functools

import jax
import jax.numpy as jnp
from jax.experimental import pallas as pl
from jax.experimental.pallas import tpu as pltpu


# -----------------------------------------------------------------------------
# Fused Pallas kernel: init_state -> n_step solver steps -> forward_ae
# Layout inside the kernel is transposed/lane-dense: (features, tile_cols),
# with the H*W column axis (multiple of 128) on the lanes.
# -----------------------------------------------------------------------------
def _grad_solver_fused_kernel(scal_ref,                      # SMEM (4*n_step,)
                              y_ref,                         # (C, t_hw) tile
                              w1t_ref, b1_ref, w2t_ref, b2_ref,   # phi fwd
                              w1_ref, w2_ref,                     # phi bwd
                              uht_ref, wht_ref, bh_ref, wot_ref,  # grad_mod
                              o_ref,
                              *, n_step, apply_forward_ae):
    # ---- hoisted weight loads (all f32; MXU has huge slack at K,M <= 32) ----
    w1t = w1t_ref[...]          # (H1, C)
    w2t = w2t_ref[...]          # (C, H1)
    w1 = w1_ref[...]            # (C, H1)
    w2 = w2_ref[...]            # (H1, C)
    uht = uht_ref[...]          # (CH, CH)
    wht = wht_ref[...]          # (CH, C)
    wot = wot_ref[...]          # (C, CH)

    y_raw = y_ref[...]          # raw observations (may contain NaN), (C, t_hw)
    # finite mask + nan_to_num computed in-kernel (no mask stream from HBM).
    # Composed from plain compares (exact isfinite semantics, always lowers).
    finite = (y_raw == y_raw) & (y_raw < jnp.inf) & (y_raw > -jnp.inf)
    m = finite.astype(jnp.float32)
    y = jnp.where(finite, y_raw, 0.0)
    x = y                        # init_state = batch.input.nan_to_num()

    tm = x.shape[1]
    h1 = w1t.shape[0]
    c = w1.shape[0]
    ch = uht.shape[0]

    # ---- bias broadcasts hoisted out of the unrolled step loop ----
    b1b = jnp.broadcast_to(b1_ref[...], (h1, tm))
    b2b = jnp.broadcast_to(b2_ref[...], (c, tm))
    bhb = jnp.broadcast_to(bh_ref[...], (ch, tm))

    h = jnp.zeros((ch, tm), jnp.float32)   # grad_mod.reset_state(batch.input)

    def phi_t(xv):
        """phi in transposed layout: returns (tanh activation, phi(x))."""
        t = jnp.tanh(jnp.dot(w1t, xv, preferred_element_type=jnp.float32) + b1b)
        ph = jnp.dot(w2t, t, preferred_element_type=jnp.float32) + b2b
        return t, ph

    for step in range(n_step):          # static unroll (n_step is small)
        alpha = scal_ref[4 * step + 0]        # 1 / (step + 1)
        beta = scal_ref[4 * step + 1]         # lr_grad * (step + 1) / n_step
        prior_scale = scal_ref[4 * step + 2]  # 2 / numel(state)
        obs_scale = scal_ref[4 * step + 3]    # 2 * w / n_observed

        # ---- analytic grad of prior_cost(x) = mean((x - phi(x))^2) ----
        t, ph = phi_t(x)
        r = x - ph
        u = jnp.dot(w2, r, preferred_element_type=jnp.float32) * (1.0 - t * t)
        g_prior = prior_scale * (
            r - jnp.dot(w1, u, preferred_element_type=jnp.float32))

        # ---- analytic grad of obs_cost(x) = w * mse(x[mask], y[mask]) ----
        g_obs = obs_scale * m * (x - y)
        grad = g_prior + g_obs

        # ---- grad_mod: recurrent gate (two small dots, no concat copy) ----
        h = jnp.tanh(jnp.dot(uht, h, preferred_element_type=jnp.float32)
                     + jnp.dot(wht, grad, preferred_element_type=jnp.float32)
                     + bhb)
        gmod = jnp.dot(wot, h, preferred_element_type=jnp.float32)

        # state - (1/(step+1) * gmod + lr*(step+1)/n_step * grad)
        x = x - (alpha * gmod + beta * grad)

    if apply_forward_ae:                 # eval mode: prior_cost.forward_ae
        _, x = phi_t(x)
    o_ref[...] = x


# -----------------------------------------------------------------------------
# Wrapper (jitted): free reshape + single pallas_call, no transposes
# -----------------------------------------------------------------------------
def _prep_weights(params):
    f32 = jnp.float32
    W1, b1, W2, b2 = params["W1"], params["b1"], params["W2"], params["b2"]
    Wh, Uh, bh, Wo = params["Wh"], params["Uh"], params["bh"], params["Wo"]
    return dict(
        w1t=W1.T.astype(f32), b1=b1.reshape(-1, 1).astype(f32),
        w2t=W2.T.astype(f32), b2=b2.reshape(-1, 1).astype(f32),
        w1=W1.astype(f32), w2=W2.astype(f32),
        uht=Uh.T.astype(f32), wht=Wh.T.astype(f32),
        bh=bh.reshape(-1, 1).astype(f32), wot=Wo.T.astype(f32),
    )


@functools.partial(jax.jit, static_argnames=(
    "n_step", "lr_grad", "obs_w", "training", "tm"))
def grad_solver_forward(input_nchw, params, *, n_step, lr_grad=0.2, obs_w=1.0,
                        training=False, tm=512):
    assert tm % 128 == 0, "column tile must be lane-aligned (multiple of 128)"
    N, C, H, W = input_nchw.shape
    HW = H * W
    H1 = params["W1"].shape[1]
    CH = params["Wh"].shape[1]

    # Native NCHW layout: reshape (free) to (N, C, HW); grid over (N, HW tiles).
    hw_128 = pl.cdiv(HW, 128) * 128
    t_hw = min(tm, hw_128)                      # clamp tile to the padded extent
    hw_p = pl.cdiv(HW, t_hw) * t_hw
    y = input_nchw.reshape(N, C, HW)
    if hw_p != HW:
        # zero-padded tail columns are column-independent and sliced off below
        y = jnp.pad(y, ((0, 0), (0, 0), (0, hw_p - HW)))

    # per-step scalar table (device-side; no host sync, no padded-mask pass)
    prior_scale = 2.0 / float(N * C * HW)
    n_obs = jnp.maximum(jnp.sum(jnp.isfinite(input_nchw)).astype(jnp.float32),
                        1.0)
    obs_scale = (2.0 * obs_w) / n_obs
    steps = jnp.arange(1, n_step + 1, dtype=jnp.float32)
    scal = jnp.stack(
        [1.0 / steps,
         (lr_grad / float(n_step)) * steps,
         jnp.full((n_step,), prior_scale, jnp.float32),
         jnp.broadcast_to(obs_scale.astype(jnp.float32), (n_step,))],
        axis=1).reshape(-1)                                  # (4 * n_step,)

    w = _prep_weights(params)

    kernel = functools.partial(_grad_solver_fused_kernel, n_step=n_step,
                               apply_forward_ae=not training)

    tile_spec = pl.BlockSpec((pl.Squeezed(), C, t_hw), lambda n, j: (n, 0, j))

    def full(shape):
        return pl.BlockSpec(shape, lambda n, j: (0, 0))

    out = pl.pallas_call(
        kernel,
        out_shape=jax.ShapeDtypeStruct((N, C, hw_p), jnp.float32),
        grid=(N, hw_p // t_hw),
        in_specs=[pl.BlockSpec(memory_space=pltpu.MemorySpace.SMEM),
                  tile_spec,
                  full((H1, C)), full((H1, 1)), full((C, H1)), full((C, 1)),
                  full((C, H1)), full((H1, C)),
                  full((CH, CH)), full((CH, C)), full((CH, 1)), full((C, CH))],
        out_specs=tile_spec,
        compiler_params=pltpu.CompilerParams(
            dimension_semantics=("parallel", "parallel"),
            vmem_limit_bytes=32 * 1024 * 1024),
    )(scal, y,
      w["w1t"], w["b1"], w["w2t"], w["b2"], w["w1"], w["w2"],
      w["uht"], w["wht"], w["bh"], w["wot"])

    if hw_p != HW:
        out = out[:, :, :HW]
    return out.reshape(N, C, H, W)


# -----------------------------------------------------------------------------
# Pure-JAX reference (uses jax.grad, f32) for a correctness check
# -----------------------------------------------------------------------------
def _reference_forward(input_nchw, params, *, n_step, lr_grad, obs_w, training):
    N, C, H, W = input_nchw.shape
    rows = N * H * W
    CH = params["Wh"].shape[1]
    y = jnp.transpose(input_nchw, (0, 2, 3, 1)).reshape(rows, C)
    mask = jnp.isfinite(y).astype(jnp.float32)
    y0 = jnp.nan_to_num(y)
    n_obs = jnp.sum(mask)

    def phi(x):
        return jnp.tanh(x @ params["W1"] + params["b1"]) @ params["W2"] + params["b2"]

    def var_cost(x):
        prior = jnp.mean((x - phi(x)) ** 2)
        obs = obs_w * jnp.sum(mask * (x - y0) ** 2) / n_obs
        return prior + obs

    state, h = y0, jnp.zeros((rows, CH), jnp.float32)
    for step in range(n_step):
        grad = jax.grad(var_cost)(state)
        h = jnp.tanh(grad @ params["Wh"] + h @ params["Uh"] + params["bh"])
        gmod = h @ params["Wo"]
        state = state - (1.0 / (step + 1) * gmod
                         + lr_grad * (step + 1) / n_step * grad)
    if not training:
        state = phi(state)
    return jnp.transpose(state.reshape(N, H, W, C), (0, 3, 1, 2))


# -----------------------------------------------------------------------------
def _init_params(key, C, H1, CH):
    ks = jax.random.split(key, 7)
    s = 0.1
    return {
        "W1": s * jax.random.normal(ks[0], (C, H1), jnp.float32),
        "b1": s * jax.random.normal(ks[2], (1, H1), jnp.float32),
        "W2": s * jax.random.normal(ks[1], (H1, C), jnp.float32),
        "b2": s * jax.random.normal(ks[3], (1, C), jnp.float32),
        "Wh": s * jax.random.normal(ks[4], (C, CH), jnp.float32),
        "Uh": s * jax.random.normal(ks[5], (CH, CH), jnp.float32),
        "bh": jnp.zeros((1, CH), jnp.float32),
        "Wo": s * jax.random.normal(ks[6], (CH, C), jnp.float32),
    }
# TODO(synk): init_state's optional x_init argument and training-time
# create_graph autodiff are not modeled; only the forward values are computed.


if __name__ == "__main__":
    N, C, H, W = 2, 4, 16, 16          # batch, dT channels, spatial
    H1, CH = 32, 16                    # prior-AE hidden, grad_mod hidden
    n_step, lr_grad, obs_w = 3, 0.2, 1.0

    key = jax.random.PRNGKey(0)
    kx, kd, kp = jax.random.split(key, 3)
    x = jax.random.normal(kx, (N, C, H, W), jnp.float32)
    drop = jax.random.bernoulli(kd, 0.3, (N, C, H, W))
    batch_input = jnp.where(drop, jnp.nan, x)   # observations with missing values

    params = _init_params(kp, C, H1, CH)

    ref = _reference_forward(batch_input, params, n_step=n_step,
                             lr_grad=lr_grad, obs_w=obs_w, training=False)

    out = grad_solver_forward(batch_input, params, n_step=n_step,
                              lr_grad=lr_grad, obs_w=obs_w, training=False,
                              tm=512)
    out = jax.block_until_ready(out)
    assert out.shape == (N, C, H, W)
    assert jnp.allclose(out, ref, atol=5e-4, rtol=5e-4), "mismatch vs reference"

    print("KERNEL_OK")
</pallas_src>

<mosaic_0001>
module attributes {stable_mosaic.version = 11 : i64} {
  func.func @_grad_solver_fused_kernel(%arg0: i32, %arg1: i32, %arg2: memref<12xf32, #tpu.memory_space<smem>>, %arg3: memref<1x4x256xf32, #tpu.memory_space<vmem>>, %arg4: memref<32x4xf32, #tpu.memory_space<vmem>>, %arg5: memref<32x1xf32, #tpu.memory_space<vmem>>, %arg6: memref<4x32xf32, #tpu.memory_space<vmem>>, %arg7: memref<4x1xf32, #tpu.memory_space<vmem>>, %arg8: memref<4x32xf32, #tpu.memory_space<vmem>>, %arg9: memref<32x4xf32, #tpu.memory_space<vmem>>, %arg10: memref<16x16xf32, #tpu.memory_space<vmem>>, %arg11: memref<16x4xf32, #tpu.memory_space<vmem>>, %arg12: memref<16x1xf32, #tpu.memory_space<vmem>>, %arg13: memref<4x16xf32, #tpu.memory_space<vmem>>, %arg14: memref<1x4x256xf32, #tpu.memory_space<vmem>>) attributes {dimension_semantics = [#tpu.dimension_semantics<parallel>, #tpu.dimension_semantics<parallel>], iteration_bounds = array<i64: 2, 1>, scalar_prefetch = 0 : i64, scratch_operands = 0 : i64, tpu.core_type = #tpu.core_type<tc>, window_params = [{transform_indices = @transform_0, window_bounds = array<i64: 12>}, {transform_indices = @transform_1, window_bounds = array<i64: 1, 4, 256>}, {pipeline_mode = #tpu.pipeline_mode<synchronous>, transform_indices = @transform_2, window_bounds = array<i64: 32, 4>}, {pipeline_mode = #tpu.pipeline_mode<synchronous>, transform_indices = @transform_3, window_bounds = array<i64: 32, 1>}, {pipeline_mode = #tpu.pipeline_mode<synchronous>, transform_indices = @transform_4, window_bounds = array<i64: 4, 32>}, {pipeline_mode = #tpu.pipeline_mode<synchronous>, transform_indices = @transform_5, window_bounds = array<i64: 4, 1>}, {pipeline_mode = #tpu.pipeline_mode<synchronous>, transform_indices = @transform_6, window_bounds = array<i64: 4, 32>}, {pipeline_mode = #tpu.pipeline_mode<synchronous>, transform_indices = @transform_7, window_bounds = array<i64: 32, 4>}, {pipeline_mode = #tpu.pipeline_mode<synchronous>, transform_indices = @transform_8, window_bounds = array<i64: 16, 16>}, {pipeline_mode = #tpu.pipeline_mode<synchronous>, transform_indices = @transform_9, window_bounds = array<i64: 16, 4>}, {pipeline_mode = #tpu.pipeline_mode<synchronous>, transform_indices = @transform_10, window_bounds = array<i64: 16, 1>}, {pipeline_mode = #tpu.pipeline_mode<synchronous>, transform_indices = @transform_11, window_bounds = array<i64: 4, 16>}, {transform_indices = @transform_12, window_bounds = array<i64: 1, 4, 256>}]} {
    %c0 = arith.constant 0 : index
    %c0_0 = arith.constant 0 : index
    %0 = vector.load %arg4[%c0, %c0_0] : memref<32x4xf32, #tpu.memory_space<vmem>>, vector<32x4xf32>
    %c0_1 = arith.constant 0 : index
    %c0_2 = arith.constant 0 : index
    %1 = vector.load %arg6[%c0_1, %c0_2] : memref<4x32xf32, #tpu.memory_space<vmem>>, vector<4x32xf32>
    %c0_3 = arith.constant 0 : index
    %c0_4 = arith.constant 0 : index
    %2 = vector.load %arg8[%c0_3, %c0_4] : memref<4x32xf32, #tpu.memory_space<vmem>>, vector<4x32xf32>
    %c0_5 = arith.constant 0 : index
    %c0_6 = arith.constant 0 : index
    %3 = vector.load %arg9[%c0_5, %c0_6] : memref<32x4xf32, #tpu.memory_space<vmem>>, vector<32x4xf32>
    %c0_7 = arith.constant 0 : index
    %c0_8 = arith.constant 0 : index
    %4 = vector.load %arg10[%c0_7, %c0_8] : memref<16x16xf32, #tpu.memory_space<vmem>>, vector<16x16xf32>
    %c0_9 = arith.constant 0 : index
    %c0_10 = arith.constant 0 : index
    %5 = vector.load %arg11[%c0_9, %c0_10] : memref<16x4xf32, #tpu.memory_space<vmem>>, vector<16x4xf32>
    %c0_11 = arith.constant 0 : index
    %c0_12 = arith.constant 0 : index
    %6 = vector.load %arg13[%c0_11, %c0_12] : memref<4x16xf32, #tpu.memory_space<vmem>>, vector<4x16xf32>
    %c0_13 = arith.constant 0 : index
    %c0_14 = arith.constant 0 : index
    %c0_15 = arith.constant 0 : index
    %7 = vector.load %arg3[%c0_13, %c0_14, %c0_15] : memref<1x4x256xf32, #tpu.memory_space<vmem>>, vector<1x4x256xf32>
    %8 = vector.shape_cast %7 : vector<1x4x256xf32> to vector<4x256xf32>
    %9 = arith.cmpf oeq, %8, %8 : vector<4x256xf32>
    %cst = arith.constant 0x7F800000 : f32
    %10 = vector.broadcast %cst : f32 to vector<4x256xf32>
    %11 = arith.cmpf olt, %8, %10 : vector<4x256xf32>
    %12 = arith.andi %9, %11 : vector<4x256xi1>
    %cst_16 = arith.constant 0xFF800000 : f32
    %13 = vector.broadcast %cst_16 : f32 to vector<4x256xf32>
    %14 = arith.cmpf ogt, %8, %13 : vector<4x256xf32>
    %15 = arith.andi %12, %14 : vector<4x256xi1>
    %16 = arith.extui %15 : vector<4x256xi1> to vector<4x256xi32>
    %17 = arith.sitofp %16 : vector<4x256xi32> to vector<4x256xf32>
    %cst_17 = arith.constant 0.000000e+00 : f32
    %18 = vector.broadcast %cst_17 : f32 to vector<4x256xf32>
    %19 = arith.select %15, %8, %18 : vector<4x256xi1>, vector<4x256xf32>
    %c0_18 = arith.constant 0 : index
    %c0_19 = arith.constant 0 : index
    %20 = vector.load %arg5[%c0_18, %c0_19] : memref<32x1xf32, #tpu.memory_space<vmem>>, vector<32x1xf32>
    %21 = vector.shape_cast %20 : vector<32x1xf32> to vector<32x1xf32>
    %22 = vector.broadcast %21 : vector<32x1xf32> to vector<32x256xf32>
    %c0_20 = arith.constant 0 : index
    %c0_21 = arith.constant 0 : index
    %23 = vector.load %arg7[%c0_20, %c0_21] : memref<4x1xf32, #tpu.memory_space<vmem>>, vector<4x1xf32>
    %24 = vector.shape_cast %23 : vector<4x1xf32> to vector<4x1xf32>
    %25 = vector.broadcast %24 : vector<4x1xf32> to vector<4x256xf32>
    %c0_22 = arith.constant 0 : index
    %c0_23 = arith.constant 0 : index
    %26 = vector.load %arg12[%c0_22, %c0_23] : memref<16x1xf32, #tpu.memory_space<vmem>>, vector<16x1xf32>
    %27 = vector.shape_cast %26 : vector<16x1xf32> to vector<16x1xf32>
    %28 = vector.broadcast %27 : vector<16x1xf32> to vector<16x256xf32>
    %cst_24 = arith.constant 0.000000e+00 : f32
    %29 = vector.broadcast %cst_24 : f32 to vector<16x256xf32>
    %c0_25 = arith.constant 0 : index
    %30 = memref.load %arg2[%c0_25] : memref<12xf32, #tpu.memory_space<smem>>
    %c1 = arith.constant 1 : index
    %31 = memref.load %arg2[%c1] : memref<12xf32, #tpu.memory_space<smem>>
    %c2 = arith.constant 2 : index
    %32 = memref.load %arg2[%c2] : memref<12xf32, #tpu.memory_space<smem>>
    %c3 = arith.constant 3 : index
    %33 = memref.load %arg2[%c3] : memref<12xf32, #tpu.memory_space<smem>>
    %cst_26 = arith.constant dense<0.000000e+00> : vector<32x256xf32>
    %34 = tpu.matmul %0, %19, %cst_26 {dimension_numbers = #tpu.dot_dimension_numbers<[1], [0], [0], [1], [0, 0, 1, 1], [], []>} : vector<32x4xf32>, vector<4x256xf32>, vector<32x256xf32> -> vector<32x256xf32>
    %35 = arith.addf %34, %22 : vector<32x256xf32>
    %36 = math.tanh %35 : vector<32x256xf32>
    %cst_27 = arith.constant dense<0.000000e+00> : vector<4x256xf32>
    %37 = tpu.matmul %1, %36, %cst_27 {dimension_numbers = #tpu.dot_dimension_numbers<[1], [0], [0], [1], [0, 0, 1, 1], [], []>} : vector<4x32xf32>, vector<32x256xf32>, vector<4x256xf32> -> vector<4x256xf32>
    %38 = arith.addf %37, %25 : vector<4x256xf32>
    %39 = arith.subf %19, %38 : vector<4x256xf32>
    %cst_28 = arith.constant dense<0.000000e+00> : vector<32x256xf32>
    %40 = tpu.matmul %3, %39, %cst_28 {dimension_numbers = #tpu.dot_dimension_numbers<[1], [0], [0], [1], [0, 0, 1, 1], [], []>} : vector<32x4xf32>, vector<4x256xf32>, vector<32x256xf32> -> vector<32x256xf32>
    %41 = arith.mulf %36, %36 : vector<32x256xf32>
    %cst_29 = arith.constant 1.000000e+00 : f32
    %42 = vector.broadcast %cst_29 : f32 to vector<32x256xf32>
    %43 = arith.subf %42, %41 : vector<32x256xf32>
    %44 = arith.mulf %40, %43 : vector<32x256xf32>
    %cst_30 = arith.constant dense<0.000000e+00> : vector<4x256xf32>
    %45 = tpu.matmul %2, %44, %cst_30 {dimension_numbers = #tpu.dot_dimension_numbers<[1], [0], [0], [1], [0, 0, 1, 1], [], []>} : vector<4x32xf32>, vector<32x256xf32>, vector<4x256xf32> -> vector<4x256xf32>
    %46 = arith.subf %39, %45 : vector<4x256xf32>
    %47 = vector.broadcast %32 : f32 to vector<4x256xf32>
    %48 = arith.mulf %47, %46 : vector<4x256xf32>
    %49 = vector.broadcast %33 : f32 to vector<4x256xf32>
    %50 = arith.mulf %49, %17 : vector<4x256xf32>
    %51 = arith.subf %19, %19 : vector<4x256xf32>
    %52 = arith.mulf %50, %51 : vector<4x256xf32>
    %53 = arith.addf %48, %52 : vector<4x256xf32>
    %cst_31 = arith.constant dense<0.000000e+00> : vector<16x256xf32>
    %54 = tpu.matmul %4, %29, %cst_31 {dimension_numbers = #tpu.dot_dimension_numbers<[1], [0], [0], [1], [0, 0, 1, 1], [], []>} : vector<16x16xf32>, vector<16x256xf32>, vector<16x256xf32> -> vector<16x256xf32>
    %cst_32 = arith.constant dense<0.000000e+00> : vector<16x256xf32>
    %55 = tpu.matmul %5, %53, %cst_32 {dimension_numbers = #tpu.dot_dimension_numbers<[1], [0], [0], [1], [0, 0, 1, 1], [], []>} : vector<16x4xf32>, vector<4x256xf32>, vector<16x256xf32> -> vector<16x256xf32>
    %56 = arith.addf %54, %55 : vector<16x256xf32>
    %57 = arith.addf %56, %28 : vector<16x256xf32>
    %58 = math.tanh %57 : vector<16x256xf32>
    %cst_33 = arith.constant dense<0.000000e+00> : vector<4x256xf32>
    %59 = tpu.matmul %6, %58, %cst_33 {dimension_numbers = #tpu.dot_dimension_numbers<[1], [0], [0], [1], [0, 0, 1, 1], [], []>} : vector<4x16xf32>, vector<16x256xf32>, vector<4x256xf32> -> vector<4x256xf32>
    %60 = vector.broadcast %30 : f32 to vector<4x256xf32>
    %61 = arith.mulf %60, %59 : vector<4x256xf32>
    %62 = vector.broadcast %31 : f32 to vector<4x256xf32>
    %63 = arith.mulf %62, %53 : vector<4x256xf32>
    %64 = arith.addf %61, %63 : vector<4x256xf32>
    %65 = arith.subf %19, %64 : vector<4x256xf32>
    %c4 = arith.constant 4 : index
    %66 = memref.load %arg2[%c4] : memref<12xf32, #tpu.memory_space<smem>>
    %c5 = arith.constant 5 : index
    %67 = memref.load %arg2[%c5] : memref<12xf32, #tpu.memory_space<smem>>
    %c6 = arith.constant 6 : index
    %68 = memref.load %arg2[%c6] : memref<12xf32, #tpu.memory_space<smem>>
    %c7 = arith.constant 7 : index
    %69 = memref.load %arg2[%c7] : memref<12xf32, #tpu.memory_space<smem>>
    %cst_34 = arith.constant dense<0.000000e+00> : vector<32x256xf32>
    %70 = tpu.matmul %0, %65, %cst_34 {dimension_numbers = #tpu.dot_dimension_numbers<[1], [0], [0], [1], [0, 0, 1, 1], [], []>} : vector<32x4xf32>, vector<4x256xf32>, vector<32x256xf32> -> vector<32x256xf32>
    %71 = arith.addf %70, %22 : vector<32x256xf32>
    %72 = math.tanh %71 : vector<32x256xf32>
    %cst_35 = arith.constant dense<0.000000e+00> : vector<4x256xf32>
    %73 = tpu.matmul %1, %72, %cst_35 {dimension_numbers = #tpu.dot_dimension_numbers<[1], [0], [0], [1], [0, 0, 1, 1], [], []>} : vector<4x32xf32>, vector<32x256xf32>, vector<4x256xf32> -> vector<4x256xf32>
    %74 = arith.addf %73, %25 : vector<4x256xf32>
    %75 = arith.subf %65, %74 : vector<4x256xf32>
    %cst_36 = arith.constant dense<0.000000e+00> : vector<32x256xf32>
    %76 = tpu.matmul %3, %75, %cst_36 {dimension_numbers = #tpu.dot_dimension_numbers<[1], [0], [0], [1], [0, 0, 1, 1], [], []>} : vector<32x4xf32>, vector<4x256xf32>, vector<32x256xf32> -> vector<32x256xf32>
    %77 = arith.mulf %72, %72 : vector<32x256xf32>
    %cst_37 = arith.constant 1.000000e+00 : f32
    %78 = vector.broadcast %cst_37 : f32 to vector<32x256xf32>
    %79 = arith.subf %78, %77 : vector<32x256xf32>
    %80 = arith.mulf %76, %79 : vector<32x256xf32>
    %cst_38 = arith.constant dense<0.000000e+00> : vector<4x256xf32>
    %81 = tpu.matmul %2, %80, %cst_38 {dimension_numbers = #tpu.dot_dimension_numbers<[1], [0], [0], [1], [0, 0, 1, 1], [], []>} : vector<4x32xf32>, vector<32x256xf32>, vector<4x256xf32> -> vector<4x256xf32>
    %82 = arith.subf %75, %81 : vector<4x256xf32>
    %83 = vector.broadcast %68 : f32 to vector<4x256xf32>
    %84 = arith.mulf %83, %82 : vector<4x256xf32>
    %85 = vector.broadcast %69 : f32 to vector<4x256xf32>
    %86 = arith.mulf %85, %17 : vector<4x256xf32>
    %87 = arith.subf %65, %19 : vector<4x256xf32>
    %88 = arith.mulf %86, %87 : vector<4x256xf32>
    %89 = arith.addf %84, %88 : vector<4x256xf32>
    %cst_39 = arith.constant dense<0.000000e+00> : vector<16x256xf32>
    %90 = tpu.matmul %4, %58, %cst_39 {dimension_numbers = #tpu.dot_dimension_numbers<[1], [0], [0], [1], [0, 0, 1, 1], [], []>} : vector<16x16xf32>, vector<16x256xf32>, vector<16x256xf32> -> vector<16x256xf32>
    %cst_40 = arith.constant dense<0.000000e+00> : vector<16x256xf32>
    %91 = tpu.matmul %5, %89, %cst_40 {dimension_numbers = #tpu.dot_dimension_numbers<[1], [0], [0], [1], [0, 0, 1, 1], [], []>} : vector<16x4xf32>, vector<4x256xf32>, vector<16x256xf32> -> vector<16x256xf32>
    %92 = arith.addf %90, %91 : vector<16x256xf32>
    %93 = arith.addf %92, %28 : vector<16x256xf32>
    %94 = math.tanh %93 : vector<16x256xf32>
    %cst_41 = arith.constant dense<0.000000e+00> : vector<4x256xf32>
    %95 = tpu.matmul %6, %94, %cst_41 {dimension_numbers = #tpu.dot_dimension_numbers<[1], [0], [0], [1], [0, 0, 1, 1], [], []>} : vector<4x16xf32>, vector<16x256xf32>, vector<4x256xf32> -> vector<4x256xf32>
    %96 = vector.broadcast %66 : f32 to vector<4x256xf32>
    %97 = arith.mulf %96, %95 : vector<4x256xf32>
    %98 = vector.broadcast %67 : f32 to vector<4x256xf32>
    %99 = arith.mulf %98, %89 : vector<4x256xf32>
    %100 = arith.addf %97, %99 : vector<4x256xf32>
    %101 = arith.subf %65, %100 : vector<4x256xf32>
    %c8 = arith.constant 8 : index
    %102 = memref.load %arg2[%c8] : memref<12xf32, #tpu.memory_space<smem>>
    %c9 = arith.constant 9 : index
    %103 = memref.load %arg2[%c9] : memref<12xf32, #tpu.memory_space<smem>>
    %c10 = arith.constant 10 : index
    %104 = memref.load %arg2[%c10] : memref<12xf32, #tpu.memory_space<smem>>
    %c11 = arith.constant 11 : index
    %105 = memref.load %arg2[%c11] : memref<12xf32, #tpu.memory_space<smem>>
    %cst_42 = arith.constant dense<0.000000e+00> : vector<32x256xf32>
    %106 = tpu.matmul %0, %101, %cst_42 {dimension_numbers = #tpu.dot_dimension_numbers<[1], [0], [0], [1], [0, 0, 1, 1], [], []>} : vector<32x4xf32>, vector<4x256xf32>, vector<32x256xf32> -> vector<32x256xf32>
    %107 = arith.addf %106, %22 : vector<32x256xf32>
    %108 = math.tanh %107 : vector<32x256xf32>
    %cst_43 = arith.constant dense<0.000000e+00> : vector<4x256xf32>
    %109 = tpu.matmul %1, %108, %cst_43 {dimension_numbers = #tpu.dot_dimension_numbers<[1], [0], [0], [1], [0, 0, 1, 1], [], []>} : vector<4x32xf32>, vector<32x256xf32>, vector<4x256xf32> -> vector<4x256xf32>
    %110 = arith.addf %109, %25 : vector<4x256xf32>
    %111 = arith.subf %101, %110 : vector<4x256xf32>
    %cst_44 = arith.constant dense<0.000000e+00> : vector<32x256xf32>
    %112 = tpu.matmul %3, %111, %cst_44 {dimension_numbers = #tpu.dot_dimension_numbers<[1], [0], [0], [1], [0, 0, 1, 1], [], []>} : vector<32x4xf32>, vector<4x256xf32>, vector<32x256xf32> -> vector<32x256xf32>
    %113 = arith.mulf %108, %108 : vector<32x256xf32>
    %cst_45 = arith.constant 1.000000e+00 : f32
    %114 = vector.broadcast %cst_45 : f32 to vector<32x256xf32>
    %115 = arith.subf %114, %113 : vector<32x256xf32>
    %116 = arith.mulf %112, %115 : vector<32x256xf32>
    %cst_46 = arith.constant dense<0.000000e+00> : vector<4x256xf32>
    %117 = tpu.matmul %2, %116, %cst_46 {dimension_numbers = #tpu.dot_dimension_numbers<[1], [0], [0], [1], [0, 0, 1, 1], [], []>} : vector<4x32xf32>, vector<32x256xf32>, vector<4x256xf32> -> vector<4x256xf32>
    %118 = arith.subf %111, %117 : vector<4x256xf32>
    %119 = vector.broadcast %104 : f32 to vector<4x256xf32>
    %120 = arith.mulf %119, %118 : vector<4x256xf32>
    %121 = vector.broadcast %105 : f32 to vector<4x256xf32>
    %122 = arith.mulf %121, %17 : vector<4x256xf32>
    %123 = arith.subf %101, %19 : vector<4x256xf32>
    %124 = arith.mulf %122, %123 : vector<4x256xf32>
    %125 = arith.addf %120, %124 : vector<4x256xf32>
    %cst_47 = arith.constant dense<0.000000e+00> : vector<16x256xf32>
    %126 = tpu.matmul %4, %94, %cst_47 {dimension_numbers = #tpu.dot_dimension_numbers<[1], [0], [0], [1], [0, 0, 1, 1], [], []>} : vector<16x16xf32>, vector<16x256xf32>, vector<16x256xf32> -> vector<16x256xf32>
    %cst_48 = arith.constant dense<0.000000e+00> : vector<16x256xf32>
    %127 = tpu.matmul %5, %125, %cst_48 {dimension_numbers = #tpu.dot_dimension_numbers<[1], [0], [0], [1], [0, 0, 1, 1], [], []>} : vector<16x4xf32>, vector<4x256xf32>, vector<16x256xf32> -> vector<16x256xf32>
    %128 = arith.addf %126, %127 : vector<16x256xf32>
    %129 = arith.addf %128, %28 : vector<16x256xf32>
    %130 = math.tanh %129 : vector<16x256xf32>
    %cst_49 = arith.constant dense<0.000000e+00> : vector<4x256xf32>
    %131 = tpu.matmul %6, %130, %cst_49 {dimension_numbers = #tpu.dot_dimension_numbers<[1], [0], [0], [1], [0, 0, 1, 1], [], []>} : vector<4x16xf32>, vector<16x256xf32>, vector<4x256xf32> -> vector<4x256xf32>
    %132 = vector.broadcast %102 : f32 to vector<4x256xf32>
    %133 = arith.mulf %132, %131 : vector<4x256xf32>
    %134 = vector.broadcast %103 : f32 to vector<4x256xf32>
    %135 = arith.mulf %134, %125 : vector<4x256xf32>
    %136 = arith.addf %133, %135 : vector<4x256xf32>
    %137 = arith.subf %101, %136 : vector<4x256xf32>
    %cst_50 = arith.constant dense<0.000000e+00> : vector<32x256xf32>
    %138 = tpu.matmul %0, %137, %cst_50 {dimension_numbers = #tpu.dot_dimension_numbers<[1], [0], [0], [1], [0, 0, 1, 1], [], []>} : vector<32x4xf32>, vector<4x256xf32>, vector<32x256xf32> -> vector<32x256xf32>
    %139 = arith.addf %138, %22 : vector<32x256xf32>
    %140 = math.tanh %139 : vector<32x256xf32>
    %cst_51 = arith.constant dense<0.000000e+00> : vector<4x256xf32>
    %141 = tpu.matmul %1, %140, %cst_51 {dimension_numbers = #tpu.dot_dimension_numbers<[1], [0], [0], [1], [0, 0, 1, 1], [], []>} : vector<4x32xf32>, vector<32x256xf32>, vector<4x256xf32> -> vector<4x256xf32>
    %142 = arith.addf %141, %25 : vector<4x256xf32>
    %c0_52 = arith.constant 0 : index
    %c0_53 = arith.constant 0 : index
    %c0_54 = arith.constant 0 : index
    %143 = vector.load %arg14[%c0_52, %c0_53, %c0_54] : memref<1x4x256xf32, #tpu.memory_space<vmem>>, vector<1x4x256xf32>
    %144 = vector.shape_cast %143 : vector<1x4x256xf32> to vector<4x256xf32>
    %145 = vector.shape_cast %142 : vector<4x256xf32> to vector<1x4x256xf32>
    tpu.vector_store %arg14[%c0_52, %c0_53, %c0_54], %145 {strides = array<i32>} : memref<1x4x256xf32, #tpu.memory_space<vmem>>, vector<1x4x256xf32>,
    return
  }
  func.func @transform_0(%arg0: i32, %arg1: i32) -> i32 {
    %c0_i32 = arith.constant 0 : i32
    %c0_i32_0 = arith.constant 0 : i32
    return %c0_i32 : i32
  }
  func.func @transform_1(%arg0: i32, %arg1: i32) -> (i32, i32, i32) {
    %c0_i32 = arith.constant 0 : i32
    %c0_i32_0 = arith.constant 0 : i32
    return %arg0, %c0_i32, %arg1 : i32, i32, i32
  }
  func.func @transform_2(%arg0: i32, %arg1: i32) -> (i32, i32) {
    %c0_i32 = arith.constant 0 : i32
    %c0_i32_0 = arith.constant 0 : i32
    %c0_i32_1 = arith.constant 0 : i32
    return %c0_i32, %c0_i32_0 : i32, i32
  }
  func.func @transform_3(%arg0: i32, %arg1: i32) -> (i32, i32) {
    %c0_i32 = arith.constant 0 : i32
    %c0_i32_0 = arith.constant 0 : i32
    %c0_i32_1 = arith.constant 0 : i32
    return %c0_i32, %c0_i32_0 : i32, i32
  }
  func.func @transform_4(%arg0: i32, %arg1: i32) -> (i32, i32) {
    %c0_i32 = arith.constant 0 : i32
    %c0_i32_0 = arith.constant 0 : i32
    %c0_i32_1 = arith.constant 0 : i32
    return %c0_i32, %c0_i32_0 : i32, i32
  }
  func.func @transform_5(%arg0: i32, %arg1: i32) -> (i32, i32) {
    %c0_i32 = arith.constant 0 : i32
    %c0_i32_0 = arith.constant 0 : i32
    %c0_i32_1 = arith.constant 0 : i32
    return %c0_i32, %c0_i32_0 : i32, i32
  }
  func.func @transform_6(%arg0: i32, %arg1: i32) -> (i32, i32) {
    %c0_i32 = arith.constant 0 : i32
    %c0_i32_0 = arith.constant 0 : i32
    %c0_i32_1 = arith.constant 0 : i32
    return %c0_i32, %c0_i32_0 : i32, i32
  }
  func.func @transform_7(%arg0: i32, %arg1: i32) -> (i32, i32) {
    %c0_i32 = arith.constant 0 : i32
    %c0_i32_0 = arith.constant 0 : i32
    %c0_i32_1 = arith.constant 0 : i32
    return %c0_i32, %c0_i32_0 : i32, i32
  }
  func.func @transform_8(%arg0: i32, %arg1: i32) -> (i32, i32) {
    %c0_i32 = arith.constant 0 : i32
    %c0_i32_0 = arith.constant 0 : i32
    %c0_i32_1 = arith.constant 0 : i32
    return %c0_i32, %c0_i32_0 : i32, i32
  }
  func.func @transform_9(%arg0: i32, %arg1: i32) -> (i32, i32) {
    %c0_i32 = arith.constant 0 : i32
    %c0_i32_0 = arith.constant 0 : i32
    %c0_i32_1 = arith.constant 0 : i32
    return %c0_i32, %c0_i32_0 : i32, i32
  }
  func.func @transform_10(%arg0: i32, %arg1: i32) -> (i32, i32) {
    %c0_i32 = arith.constant 0 : i32
    %c0_i32_0 = arith.constant 0 : i32
    %c0_i32_1 = arith.constant 0 : i32
    return %c0_i32, %c0_i32_0 : i32, i32
  }
  func.func @transform_11(%arg0: i32, %arg1: i32) -> (i32, i32) {
    %c0_i32 = arith.constant 0 : i32
    %c0_i32_0 = arith.constant 0 : i32
    %c0_i32_1 = arith.constant 0 : i32
    return %c0_i32, %c0_i32_0 : i32, i32
  }
  func.func @transform_12(%arg0: i32, %arg1: i32) -> (i32, i32, i32) {
    %c0_i32 = arith.constant 0 : i32
    %c0_i32_0 = arith.constant 0 : i32
    return %arg0, %c0_i32, %arg1 : i32, i32, i32
  }
}

</mosaic_0001>

<bundles_post_ra>
// kernel: grad_solver_forward.1
= control target key start
LH: loop header
LB: loop body
LE: loop exit
PB: predicated region body
PF: predicated region fallthrough
CT: control target
= control target key end

     0   :  { %17 = vsyncpa [#allocation3], 0  ;;  %s3127_s21 = smov 0   ;;  %s3129_s22 = smov 0   ;;  %s3629_s0 = inlined_call_operand.vmem [shape: f32[12], index: 0, kind: input, shape index: {}]   ;;  %s3630_s1 = inlined_call_operand.vmem [shape: f32[2,4,256], index: 1, kind: input, shape index: {}]   ;;  %s3631_s2 = inlined_call_operand.vmem [shape: f32[32,4], index: 2, kind: input, shape index: {}]   ;;  %s3632_s3 = inlined_call_operand.vmem [shape: f32[32,1], index: 3, kind: input, shape index: {}]   ;;  %s3633_s4 = inlined_call_operand.vmem [shape: f32[4,32], index: 4, kind: input, shape index: {}]   ;;  %s3634_s5 = inlined_call_operand.vmem [shape: f32[4,1], index: 5, kind: input, shape index: {}]   ;;  %s3635_s6 = inlined_call_operand.vmem [shape: f32[4,32], index: 6, kind: input, shape index: {}]   ;;  %s3636_s7 = inlined_call_operand.vmem [shape: f32[32,4], index: 7, kind: input, shape index: {}]   ;;  %s3637_s8 = inlined_call_operand.vmem [shape: f32[16,16], index: 8, kind: input, shape index: {}]   ;;  %s3638_s9 = inlined_call_operand.vmem [shape: f32[16,4], index: 9, kind: input, shape index: {}]   ;;  %s3639_s10 = inlined_call_operand.vmem [shape: f32[16,1], index: 10, kind: input, shape index: {}]   ;;  %s3640_s11 = inlined_call_operand.vmem [shape: f32[4,16], index: 11, kind: input, shape index: {}]   ;;  %s3641_s12 = inlined_call_operand.vmem [shape: f32[2,4,256], index: 12, kind: output, shape index: {}]  }
   0x1   :  { %s3131_s23 = smov 0  }
   0x2 LB: > { %s2777_s24 = sadd.s32 4294967295, %s3057_s23   ;;  %s35_s25 = sadd.s32 1, %s3053_s22  ;;  %s3057_s23 = sphi %s3131_s23, %s23_s23   ;;  %s3053_s22 = sphi %s3129_s22, %s3647_s22   ;;  %s3049_s21 = sphi %s3127_s21, %s3646_s21  }
   0x3   : > { %p37_p0 = scmp.ge.s32.totalorder %s35_s25, 2  ;;  %p2779_p1 = scmp.ge.s32.totalorder %s3057_s23, 1 }
   0x4   : > { %p327_p2 = scmp.lt.s32.totalorder %s3057_s23, 3  ;;  %p3152_p4 = scmp.eq.s32.totalorder %s2777_s24, 0 }
   0x5   : > { %s3649_s25 = smov (%p37_p0, %s35_s25), 0  ;;  %s340_s30 = sshll.u32 %s3629_s0, 4  ;;  %s341_s30 = int_to_ptr.vmem [resolvable:$true] %s340_s30 }
   0x6   : > { %p3148_p3 = pnand %p2779_p1, %p327_p2  ;;  %s3016_s13 = scalar_lea.vmem %s341_s30, 16 }
   0x7   : > { %p3017_p7 = scmp.ne.s32.totalorder %s341_s30, %s3016_s13  ;;  %p3024_p11 = scmp.lt.s32.totalorder %s341_s30, %s341_s30 }
   0x8   : > { %p2888_p5 = pneg %p3148_p3  ;;  %p3025_p12 = scmp.lt.s32.totalorder %s3016_s13, %s3016_s13 }
   0xa   : > { %p2889_p6 = pnand %p3152_p4, %p2888_p5  ;;  %p3026_p13 = por %p3025_p12, %p3024_p11 }
   0xc   : > { %p3018_p8 = pneg %p2889_p6 }
   0xe   : > { %p3019_p9 = pnand %p3018_p8, %p3017_p7 }
  0x10   : > { %p3020_p10 = pneg %p3019_p9 }
  0x12   : > { %p3027_p0 = pnand %p3026_p13, %p3020_p10 }
  0x14   : > { %3030 = shalt.err (!%p3027_p0)
}
  0x15   : > { %s3059_s14 = smov [#allocation2]   ;;  %396 = sbr.rel (%p3148_p3) target bundleno = 4329 (0x10e9), region = 68 }
  0x16   : > { %2891 = dma.vmem_to_smem (!%p2889_p6), %s341_s30, 16, %s3059_s14, [#allocation3]  }
  0x1a   : > { %3044 = dma.done.wait (%p3152_p4), [#allocation3], 16  }
  0x1b   : > { %3046 = vsyncadd (%p3152_p4), [#allocation3], 4294967280 }
  0x1c   : > { %402 = sfence }
  0x1d   : > { %p448_p1 = scmp.lt.s32.totalorder %s3049_s21, 1  ;;  %v3060_v0 = vmov 0.0   ;;  %v494_v1 = vld [vmem:[%s3632_s3 + $0x18] sm:$0xff]  ;;  %v3061_v2 = vmov 0   ;;  %v492_v3 = vld [vmem:[%s3632_s3 + $0x8] sm:$0xff]  ;;  %v493_v4 = vld [vmem:[%s3632_s3 + $0x10] sm:$0xff] }
  0x1e   : > { %633 = vmatprep.mubr.f32.mxu1 %v3060_v0  ;;  %621 = vmatprep.mubr.f32.mxu0 %v3060_v0  ;;  %v491_v5 = vld [vmem:[%s3632_s3] sm:$0xff]  ;;  %v522_v8 = vld [vmem:[%s3639_s10 + $0x8] sm:$0xff]  ;;  %vm552_vm5 = vcmask 1043456   ;;  %v3212_v12 = vld [vmem:[%s3631_s2 + $0x10] sm:$0xff]  ;;  %vm539_vm6 = vcmask 31744   ;;  %vm654_vm7 = vcmask 261120  }
  0x1f   : > { %s3651_s21 = smov (!%p448_p1, %s3049_s21), 1  ;;  %2921 = vset.pattern.permute.xlu0 %v3061_v2  ;;  %2922 = vset.pattern.permute.xlu1 %v3061_v2  ;;  %v515_v7 = vld [vmem:[%s3634_s5] sm:$0xf]  ;;  %v3236_v15 = vld [vmem:[%s3631_s2 + $0x18] sm:$0xff]  ;;  %v3242_v16 = vld [vmem:[%s3631_s2 + $0x8] sm:$0xff]  ;;  %vm1040_vm8 = vcmask 130048  }
  0x20   : > { %512 = vperm.xlu0 %2921, %v494_v1   ;;  %502 = vperm.xlu1 %2922, %v492_v3   ;;  %s2872_s19 = sshll.u32 %s3651_s21, 3  ;;  %v3217_v13 = vld [vmem:[%s3631_s2] sm:$0xff]  ;;  %v3298_v55 = vld [vmem:[%s3636_s7 + $0x8] sm:$0xff]  ;;  %v3307_v56 = vld [vmem:[%s3636_s7 + $0x10] sm:$0xff]  ;;  %s2791_s17 = sld [smem:[#allocation2 + $0x3]] }
  0x21   : > { %s455_s30 = scalar_lea.vmem %s3630_s1, %s2872_s19  ;;  %v521_v14 = vld [vmem:[%s3639_s10] sm:$0xff]  ;;  %v3315_v57 = vld [vmem:[%s3636_s7 + $0x18] sm:$0xff]  ;;  %s2790_s18 = sld [smem:[#allocation2 + $0x2]] }
  0x22   : > { %v482_v6 = vld [vmem:[%s455_s30] sm:$0xff]  ;;  %s2789_s30 = sld [smem:[#allocation2 + $0x1]] }
  0x23   : > { %vm483_vm0 = vcmp.eq.f32.partialorder %v482_v6, %v482_v6  ;;  %vm484_vm1 = vcmp.lt.f32.partialorder %v482_v6, inf  ;;  %vm486_vm2 = vcmp.gt.f32.partialorder %v482_v6, -inf  ;;  %v3269_v44 = vld [vmem:[%s3633_s4] sm:$0xf]  ;;  %s533_s13 = sld [smem:[#allocation2]] }
  0x24   : > { %507 = vperm.xlu0 %2921, %v493_v4   ;;  %497 = vperm.xlu1 %2922, %v491_v5   ;;  %vm485_vm3 = vmand %vm483_vm0, %vm484_vm1  ;;  %v3286_v54 = vld [vmem:[%s3636_s7] sm:$0xff]  ;;  %s2816_s14 = sld [smem:[#allocation2 + $0x7]] }
  0x25   : > { %vm3199_vm4 = vmand %vm485_vm3, %vm486_vm2  ;;  %v3354_v9 = vld [vmem:[%s3638_s9] sm:$0xff]  ;;  %s2815_s15 = sld [smem:[#allocation2 + $0x6]] }
  0x26   : > { %v3205_v10 = vsel %vm3199_vm4, %v482_v6, 0.0  ;;  %s2814_s16 = sld [smem:[#allocation2 + $0x5]] }
  0x27   : > { %v538_v11 = vcombine.high %v3205_v10, %v3205_v10  ;;  %s2840_s20 = sld [smem:[#allocation2 + $0xa]] }
  0x28   : > { %518 = vperm.xlu0 %2921, %v515_v7   ;;  %530 = vperm.xlu1 %2922, %v522_v8   ;;  %s2839_s24 = sld [smem:[#allocation2 + $0x9]] }
  0x29   : > { %2882 = vmatprep.subr.msk.mxu1 %vm552_vm5, %v538_v11  ;;  %2792 = vmatprep.subr.msk.mxu0 %vm552_vm5, %v538_v11  ;;  %s2838_s26 = sld [smem:[#allocation2 + $0x8]] }
  0x2a   : > { %2883 = vmatpush1.msk.msra.mxu1 %vm552_vm5, %v3205_v10  ;;  %2793 = vmatpush1.msk.msra.mxu0 %vm552_vm5, %v3205_v10 }
  0x2b   : > { %2796 = vmatmul.mubr.msk.f32.vlgmr.msra.gmra.mxu1 %vm539_vm6, %v3212_v12  ;;  %2794 = vmatmul.mubr.msk.f32.vlgmr.msra.gmra.mxu0 %vm539_vm6, %v3217_v13 }
  0x2c   : > { %639 = vmatprep.mubr.f32.mxu1 %v3060_v0  ;;  %627 = vmatprep.mubr.f32.mxu0 %v3060_v0 }
  0x2d   : > { %525 = vperm.xlu0 %2921, %v521_v14  }
  0x2f   : > { %2797 = vmatmul.mubr.msk.f32.gmra.mxu1 %vm539_vm6, %v3236_v15  ;;  %2795 = vmatmul.mubr.msk.f32.gmra.mxu0 %vm539_vm6, %v3242_v16 }
  0x30   : > { %722 = vmatprep.mubr.f32.mxu1 %v3060_v0  ;;  %932 = vmatprep.mubr.f32.mxu0 %v3060_v0 }
  0x9b   : > { %v3250_v17 = vpop.permute.xlu0 %512  ;;  %v3252_v20 = vpop.permute.xlu1 %502 }
  0x9f   : > { %v3254_v25 = vpop.permute.xlu0 %507  ;;  %v3260_v32 = vpop.permute.xlu1 %497 }
  0xa3   : > { %v3274_v47 = vpop.permute.xlu0 %518 }
  0xeb   : > { %v635_v18 = vpop.f32.mrf.mxu1  ;;  %v623_v19 = vpop.f32.mrf.mxu0 }
  0xec   : > { %v636_v31 = vadd.f32 %v635_v18, %v3254_v25  ;;  %v624_v36 = vadd.f32 %v623_v19, %v3260_v32 }
  0xed   : > { %v637_v21 = vpop.f32.mrf.mxu1  ;;  %v625_v22 = vpop.f32.mrf.mxu0 }
  0xee   : > { %v638_v29 = vadd.f32 %v637_v21, %v3254_v25  ;;  %v626_v35 = vadd.f32 %v625_v22, %v3260_v32 }
  0xef   : > { %v641_v23 = vpop.f32.mrf.mxu1  ;;  %v629_v24 = vpop.f32.mrf.mxu0 }
  0xf0   : > { %v642_v26 = vadd.f32 %v641_v23, %v3250_v17  ;;  %v630_v34 = vadd.f32 %v629_v24, %v3252_v20 }
  0xf1   : > { %v643_v27 = vpop.f32.mrf.mxu1  ;;  %v631_v28 = vpop.f32.mrf.mxu0 }
  0xf2   : > { %v644_v30 = vadd.f32 %v643_v27, %v3250_v17  ;;  %v632_v33 = vadd.f32 %v631_v28, %v3252_v20 }
  0xf4   : > { %2923 = vtanh.f32 %v644_v30 }
  0xf5   : > { %2925 = vtanh.f32 %v642_v26 }
  0xf6   : > { %2927 = vtanh.f32 %v638_v29 }
  0xf7   : > { %2929 = vtanh.f32 %v636_v31 }
  0xf8   : > { %2931 = vtanh.f32 %v632_v33 }
  0xf9   : > { %2933 = vtanh.f32 %v630_v34 }
  0xfa   : > { %2935 = vtanh.f32 %v626_v35 }
  0xfb   : > { %2937 = vtanh.f32 %v624_v36 }
 0x101   : > { %v2924_v37 = vpop.eup %2923 }
 0x102   : > { %v2926_v38 = vpop.eup %2925  ;;  %682 = vmatprep.subr.mxu1 %v2924_v37  ;;  %v848_v63 = vmul.f32 %v2924_v37, %v2924_v37  ;;  %v3322_v37 = vld [vmem:[%s3635_s6] sm:$0xf] }
 0x103   : > { %v2928_v39 = vpop.eup %2927  ;;  %683 = vmatpush1.msra.mxu1 %v2926_v38  ;;  %v847_v2 = vmul.f32 %v2926_v38, %v2926_v38  ;;  %v3330_v38 = vld [vmem:[%s3637_s8] sm:$0xff] }
 0x104   : > { %v2930_v40 = vpop.eup %2929  ;;  %684 = vmatprep.subr.mxu1 %v2928_v39  ;;  %v846_v3 = vmul.f32 %v2928_v39, %v2928_v39  ;;  %v856_v7 = vsub.f32 1.0, %v848_v63  ;;  %v3337_v39 = vld [vmem:[%s3637_s8 + $0x8] sm:$0xff] }
 0x105   : > { %v2932_v41 = vpop.eup %2931  ;;  %685 = vmatpush1.msra.mxu1 %v2930_v40  ;;  %v845_v4 = vmul.f32 %v2930_v40, %v2930_v40  ;;  %v855_v11 = vsub.f32 1.0, %v847_v2  ;;  %v3345_v40 = vsel %vm3199_vm4, 1.0, %v3060_v0 }
 0x106   : > { %v2934_v42 = vpop.eup %2933  ;;  %686 = vmatprep.subr.mxu1 %v2932_v41  ;;  %v844_v6 = vmul.f32 %v2932_v41, %v2932_v41  ;;  %v854_v19 = vsub.f32 1.0, %v846_v3  ;;  %v946_v41 = vstv %s2791_s17  ;;  %s2813_s17 = sld [smem:[#allocation2 + $0x4]] }
 0x107   : > { %v2936_v43 = vpop.eup %2935  ;;  %687 = vmatpush1.msra.mxu1 %v2934_v42  ;;  %v843_v8 = vmul.f32 %v2934_v42, %v2934_v42  ;;  %v853_v23 = vsub.f32 1.0, %v845_v4  ;;  %v3369_v4 = vpop.permute.xlu1 %530 }
 0x108   : > { %v2938_v45 = vpop.eup %2937  ;;  %688 = vmatprep.subr.mxu1 %v2936_v43  ;;  %v842_v18 = vmul.f32 %v2936_v43, %v2936_v43  ;;  %v852_v26 = vsub.f32 1.0, %v844_v6  ;;  %v947_v43 = vmul.f32 %v3345_v40, %v946_v41  ;;  %v3371_v6 = vpop.permute.xlu0 %525 }
 0x109   : > { %689 = vmatpush1.msra.mxu1 %v2938_v45  ;;  %v841_v22 = vmul.f32 %v2938_v45, %v2938_v45  ;;  %v851_v28 = vsub.f32 1.0, %v843_v8  ;;  %v948_v45 = vsub.f32 %v3205_v10, %v3205_v10 }
 0x10a   : > { %2798 = vmatmul.mubr.msk.f32.vlgmr.msra.gmra.mxu1 %vm654_vm7, %v3269_v44  ;;  %v850_v30 = vsub.f32 1.0, %v842_v18 }
 0x10b   : > { %816 = vmatprep.mubr.f32.mxu1 %v3060_v0  ;;  %v849_v33 = vsub.f32 1.0, %v841_v22  ;;  %v3388_v22 = vld [vmem:[%s3640_s11] sm:$0xf] }
 0x1ca   : > { %v724_v46 = vpop.f32.mrf.mxu1 }
 0x1cb   : > { %v725_v49 = vadd.f32 %v724_v46, %v3274_v47 }
 0x1cc   : > { %v726_v48 = vpop.f32.mrf.mxu1 }
 0x1cd   : > { %v727_v50 = vadd.f32 %v726_v48, %v3274_v47 }
 0x1cf   : > { %v731_v51 = vcombine.low %v725_v49, %v727_v50  ;;  %v944_v49 = vstv %s2790_s18  ;;  %s2841_s18 = sld [smem:[#allocation2 + $0xb]] }
 0x1d1   : > { %v3279_v52 = vsub.f32 %v3205_v10, %v731_v51  ;;  %v949_v51 = vmul.f32 %v948_v45, %v947_v43 }
 0x1d3   : > { %v735_v53 = vcombine.high %v3279_v52, %v3279_v52 }
 0x1d5   : > { %2799 = vmatprep.subr.msk.mxu1 %vm552_vm5, %v735_v53 }
 0x1d6   : > { %2800 = vmatpush1.msk.msra.mxu1 %vm552_vm5, %v3279_v52 }
 0x1d7   : > { %2801 = vmatmul.mubr.msk.f32.vlgmr.msra.gmra.mxu1 %vm539_vm6, %v3286_v54  ;;  %2877 = vmatprep.subr.mxu1 %v3060_v0 }
 0x1d8   : > { %822 = vmatprep.mubr.f32.mxu1 %v3060_v0  ;;  %2878 = vmatpush3.msra.mxu1 %v3060_v0 }
 0x1db   : > { %2802 = vmatmul.mubr.msk.f32.gmra.mxu1 %vm539_vm6, %v3298_v55 }
 0x1dc   : > { %828 = vmatprep.mubr.f32.mxu1 %v3060_v0 }
 0x1df   : > { %2803 = vmatmul.mubr.msk.f32.gmra.mxu1 %vm539_vm6, %v3307_v56 }
 0x1e0   : > { %834 = vmatprep.mubr.f32.mxu1 %v3060_v0 }
 0x1e3   : > { %2804 = vmatmul.mubr.msk.f32.gmra.mxu1 %vm539_vm6, %v3315_v57 }
 0x1e4   : > { %2879 = vmatprep.mubr.msk.f32.mxu1 %vm1040_vm8, %v3330_v38 }
 0x1e7   : > { %2880 = vmatmul.mubr.msk.f32.vlgmr.msra.gmra.mxu1 %vm1040_vm8, %v3337_v39 }
 0x1e8   : > { %1295 = vmatprep.mubr.f32.mxu1 %v3060_v0 }
 0x297   : > { %v818_v58 = vpop.f32.mrf.mxu1 }
 0x298   : > { %v857_v36 = vmul.f32 %v849_v33, %v818_v58 }
 0x299   : > { %v820_v59 = vpop.f32.mrf.mxu1 }
 0x29a   : > { %v858_v35 = vmul.f32 %v850_v30, %v820_v59 }
 0x29b   : > { %v824_v60 = vpop.f32.mrf.mxu1 }
 0x29c   : > { %v859_v34 = vmul.f32 %v851_v28, %v824_v60 }
 0x29d   : > { %v826_v61 = vpop.f32.mrf.mxu1 }
 0x29e   : > { %v860_v31 = vmul.f32 %v852_v26, %v826_v61  ;;  %v1206_v26 = vstv %s533_s13 }
 0x29f   : > { %v830_v62 = vpop.f32.mrf.mxu1 }
 0x2a0   : > { %v861_v29 = vmul.f32 %v853_v23, %v830_v62 }
 0x2a1   : > { %v832_v1 = vpop.f32.mrf.mxu1 }
 0x2a2   : > { %v862_v27 = vmul.f32 %v854_v19, %v832_v1 }
 0x2a3   : > { %v836_v5 = vpop.f32.mrf.mxu1 }
 0x2a4   : > { %v863_v24 = vmul.f32 %v855_v11, %v836_v5 }
 0x2a5   : > { %v838_v14 = vpop.f32.mrf.mxu1 }
 0x2a6   : > { %v864_v21 = vmul.f32 %v856_v7, %v838_v14 }
 0x2a7   : > { %v2881_v60 = vpop.f32.mrf.mxu1 }
 0x2a8   : > { %892 = vmatprep.subr.mxu0 %v864_v21 }
 0x2a9   : > { %893 = vmatpush1.msra.mxu0 %v863_v24  ;;  %v1113_v62 = vpop.f32.mrf.mxu1  ;;  %v1209_v24 = vstv %s2789_s30 }
 0x2aa   : > { %894 = vmatprep.subr.mxu0 %v862_v27 }
 0x2ab   : > { %895 = vmatpush1.msra.mxu0 %v861_v29 }
 0x2ac   : > { %896 = vmatprep.subr.mxu0 %v860_v31 }
 0x2ad   : > { %897 = vmatpush1.msra.mxu0 %v859_v34 }
 0x2ae   : > { %898 = vmatprep.subr.mxu0 %v858_v35 }
 0x2af   : > { %899 = vmatpush1.msra.mxu0 %v857_v36 }
 0x2b0   : > { %2805 = vmatmul.mubr.msk.f32.vlgmr.msra.gmra.mxu0 %vm654_vm7, %v3322_v37 }
 0x2b1   : > { %1027 = vmatprep.mubr.f32.mxu0 %v3060_v0 }
 0x370   : > { %v934_v42 = vpop.f32.mrf.mxu0 }
 0x372   : > { %v936_v46 = vpop.f32.mrf.mxu0 }
 0x373   : > { %v941_v48 = vcombine.low %v934_v42, %v936_v46 }
 0x375   : > { %v943_v50 = vsub.f32 %v3279_v52, %v941_v48  ;;  %v3364_v52 = vld [vmem:[%s3638_s9 + $0x8] sm:$0xff] }
 0x377   : > { %v945_v53 = vmul.f32 %v944_v49, %v943_v50 }
 0x379   : > { %v950_v58 = vadd.f32 %v949_v51, %v945_v53 }
 0x37b   : > { %v952_v59 = vcombine.high %v950_v58, %v950_v58  ;;  %v1210_v27 = vmul.f32 %v1209_v24, %v950_v58 }
 0x37d   : > { %2806 = vmatprep.subr.msk.mxu0 %vm552_vm5, %v952_v59  ;;  %v1212_v33 = vcombine.high %v1210_v27, %v1210_v27 }
 0x37e   : > { %2807 = vmatpush1.msk.msra.mxu0 %vm552_vm5, %v950_v58 }
 0x37f   : > { %2808 = vmatmul.mubr.msk.f32.vlgmr.msra.gmra.mxu0 %vm539_vm6, %v3354_v9 }
 0x380   : > { %1033 = vmatprep.mubr.f32.mxu0 %v3060_v0 }
 0x383   : > { %2809 = vmatmul.mubr.msk.f32.gmra.mxu0 %vm539_vm6, %v3364_v52 }
 0x384   : > { %1199 = vmatprep.mubr.f32.mxu0 %v3060_v0 }
 0x43f   : > { %v1029_v61 = vpop.f32.mrf.mxu0 }
 0x440   : > { %v1114_v2 = vadd.f32 %v1113_v62, %v1029_v61 }
 0x441   : > { %v1031_v63 = vpop.f32.mrf.mxu0 }
 0x442   : > { %v1125_v11 = vadd.f32 %v1031_v63, %v3371_v6  ;;  %v1124_v14 = vadd.f32 %v1114_v2, %v3371_v6 }
 0x443   : > { %v1035_v1 = vpop.f32.mrf.mxu0 }
 0x444   : > { %v1120_v3 = vadd.f32 %v2881_v60, %v1035_v1 }
 0x445   : > { %v1037_v5 = vpop.f32.mrf.mxu0 }
 0x446   : > { %v1126_v7 = vadd.f32 %v1120_v3, %v3369_v4  ;;  %v1127_v8 = vadd.f32 %v1037_v5, %v3369_v4 }
 0x448   : > { %2939 = vtanh.f32 %v1126_v7 }
 0x449   : > { %2941 = vtanh.f32 %v1127_v8 }
 0x44a   : > { %2943 = vtanh.f32 %v1125_v11 }
 0x44b   : > { %2945 = vtanh.f32 %v1124_v14 }
 0x455   : > { %v3377_v18 = vpop.eup %2939 }
 0x456   : > { %v3379_v19 = vpop.eup %2941 }
 0x457   : > { %1163 = vmatprep.subr.mxu0 %v3379_v19  ;;  %v3382_v21 = vpop.eup %2943 }
 0x458   : > { %1164 = vmatpush1.msra.mxu0 %v3377_v18  ;;  %v3390_v23 = vpop.eup %2945 }
 0x459   : > { %1165 = vmatprep.subr.mxu0 %v3382_v21 }
 0x45a   : > { %1166 = vmatpush1.msra.mxu0 %v3390_v23 }
 0x45b   : > { %2812 = vmatmul.mubr.msk.f32.vlgmr.msra.gmra.mxu0 %vm1040_vm8, %v3388_v22 }
 0x45c   : > { %1392 = vmatprep.mubr.f32.mxu0 %v3060_v0 }
 0x51b   : > { %v1201_v28 = vpop.f32.mrf.mxu0 }
 0x51c   : > { %v1207_v29 = vmul.f32 %v1206_v26, %v1201_v28 }
 0x51d   : > { %v1203_v30 = vpop.f32.mrf.mxu0 }
 0x51e   : > { %v1208_v31 = vmul.f32 %v1206_v26, %v1203_v30  ;;  %v1214_v34 = vadd.f32 %v1210_v27, %v1207_v29 }
 0x520   : > { %v1215_v35 = vadd.f32 %v1212_v33, %v1208_v31 }
 0x522   : > { %v1218_v36 = vcombine.low %v1214_v34, %v1215_v35 }
 0x524   : > { %v3398_v41 = vsub.f32 %v3205_v10, %v1218_v36 }
 0x526   : > { %v1226_v42 = vcombine.high %v3398_v41, %v3398_v41 }
 0x528   : > { %2817 = vmatprep.subr.msk.mxu1 %vm552_vm5, %v1226_v42 }
 0x529   : > { %2818 = vmatpush1.msk.msra.mxu1 %vm552_vm5, %v3398_v41 }
 0x52a   : > { %2819 = vmatmul.mubr.msk.f32.vlgmr.msra.gmra.mxu1 %vm539_vm6, %v3217_v13 }
 0x52b   : > { %1301 = vmatprep.mubr.f32.mxu1 %v3060_v0 }
 0x52e   : > { %2820 = vmatmul.mubr.msk.f32.gmra.mxu1 %vm539_vm6, %v3242_v16 }
 0x52f   : > { %1307 = vmatprep.mubr.f32.mxu1 %v3060_v0 }
 0x532   : > { %2821 = vmatmul.mubr.msk.f32.gmra.mxu1 %vm539_vm6, %v3212_v12 }
 0x533   : > { %1313 = vmatprep.mubr.f32.mxu1 %v3060_v0 }
 0x536   : > { %2822 = vmatmul.mubr.msk.f32.gmra.mxu1 %vm539_vm6, %v3236_v15 }
 0x537   : > { %1587 = vmatprep.mubr.f32.mxu1 %v3060_v0 }
 0x5ea   : > { %v1297_v43 = vpop.f32.mrf.mxu1 }
 0x5eb   : > { %v1298_v2 = vadd.f32 %v1297_v43, %v3260_v32 }
 0x5ec   : > { %v1299_v45 = vpop.f32.mrf.mxu1 }
 0x5ed   : > { %v1300_v1 = vadd.f32 %v1299_v45, %v3260_v32 }
 0x5ee   : > { %v1303_v46 = vpop.f32.mrf.mxu1 }
 0x5ef   : > { %v1304_v63 = vadd.f32 %v1303_v46, %v3252_v20 }
 0x5f0   : > { %v1305_v48 = vpop.f32.mrf.mxu1 }
 0x5f1   : > { %v1306_v62 = vadd.f32 %v1305_v48, %v3252_v20 }
 0x5f2   : > { %v1309_v49 = vpop.f32.mrf.mxu1 }
 0x5f3   : > { %v1310_v61 = vadd.f32 %v1309_v49, %v3254_v25 }
 0x5f4   : > { %v1311_v50 = vpop.f32.mrf.mxu1 }
 0x5f5   : > { %v1312_v59 = vadd.f32 %v1311_v50, %v3254_v25 }
 0x5f6   : > { %v1315_v51 = vpop.f32.mrf.mxu1 }
 0x5f7   : > { %v1316_v53 = vadd.f32 %v1315_v51, %v3250_v17 }
 0x5f8   : > { %v1317_v58 = vpop.f32.mrf.mxu1 }
 0x5f9   : > { %v1318_v60 = vadd.f32 %v1317_v58, %v3250_v17 }
 0x5fb   : > { %2947 = vtanh.f32 %v1318_v60 }
 0x5fc   : > { %2949 = vtanh.f32 %v1316_v53 }
 0x5fd   : > { %2951 = vtanh.f32 %v1312_v59 }
 0x5fe   : > { %2953 = vtanh.f32 %v1310_v61 }
 0x5ff   : > { %2955 = vtanh.f32 %v1306_v62 }
 0x600   : > { %2957 = vtanh.f32 %v1304_v63 }
 0x601   : > { %2959 = vtanh.f32 %v1300_v1 }
 0x602   : > { %2961 = vtanh.f32 %v1298_v2 }
 0x608   : > { %v2948_v3 = vpop.eup %2947 }
 0x609   : > { %v2950_v5 = vpop.eup %2949  ;;  %1352 = vmatprep.subr.mxu0 %v2948_v3  ;;  %v1506_v36 = vmul.f32 %v2948_v3, %v2948_v3 }
 0x60a   : > { %v2952_v7 = vpop.eup %2951  ;;  %1353 = vmatpush1.msra.mxu0 %v2950_v5  ;;  %v1505_v43 = vmul.f32 %v2950_v5, %v2950_v5 }
 0x60b   : > { %v2954_v8 = vpop.eup %2953  ;;  %1354 = vmatprep.subr.mxu0 %v2952_v7  ;;  %v1504_v45 = vmul.f32 %v2952_v7, %v2952_v7  ;;  %v1514_v50 = vsub.f32 1.0, %v1506_v36 }
 0x60c   : > { %v2956_v11 = vpop.eup %2955  ;;  %1355 = vmatpush1.msra.mxu0 %v2954_v8  ;;  %v1503_v46 = vmul.f32 %v2954_v8, %v2954_v8  ;;  %v1513_v53 = vsub.f32 1.0, %v1505_v43 }
 0x60d   : > { %v2958_v14 = vpop.eup %2957  ;;  %1356 = vmatprep.subr.mxu0 %v2956_v11  ;;  %v1502_v49 = vmul.f32 %v2956_v11, %v2956_v11  ;;  %v1512_v60 = vsub.f32 1.0, %v1504_v45 }
 0x60e   : > { %v2960_v24 = vpop.eup %2959  ;;  %1357 = vmatpush1.msra.mxu0 %v2958_v14  ;;  %v1501_v51 = vmul.f32 %v2958_v14, %v2958_v14  ;;  %v1511_v63 = vsub.f32 1.0, %v1503_v46 }
 0x60f   : > { %v2962_v26 = vpop.eup %2961  ;;  %1358 = vmatprep.subr.mxu0 %v2960_v24  ;;  %v1500_v59 = vmul.f32 %v2960_v24, %v2960_v24  ;;  %v1510_v2 = vsub.f32 1.0, %v1502_v49 }
 0x610   : > { %1359 = vmatpush1.msra.mxu0 %v2962_v26  ;;  %v1499_v62 = vmul.f32 %v2962_v26, %v2962_v26  ;;  %v1509_v3 = vsub.f32 1.0, %v1501_v51 }
 0x611   : > { %2823 = vmatmul.mubr.msk.f32.vlgmr.msra.gmra.mxu0 %vm654_vm7, %v3269_v44  ;;  %v1508_v5 = vsub.f32 1.0, %v1500_v59 }
 0x612   : > { %1474 = vmatprep.mubr.f32.mxu0 %v3060_v0  ;;  %v1507_v8 = vsub.f32 1.0, %v1499_v62 }
 0x6d1   : > { %v1394_v27 = vpop.f32.mrf.mxu0 }
 0x6d2   : > { %v1395_v29 = vadd.f32 %v1394_v27, %v3274_v47 }
 0x6d3   : > { %v1396_v28 = vpop.f32.mrf.mxu0 }
 0x6d4   : > { %v1397_v30 = vadd.f32 %v1396_v28, %v3274_v47 }
 0x6d6   : > { %v1401_v31 = vcombine.low %v1395_v29, %v1397_v30  ;;  %v1601_v29 = vstv %s2816_s14 }
 0x6d8   : > { %v3431_v33 = vsub.f32 %v3398_v41, %v1401_v31 }
 0x6da   : > { %v1405_v34 = vcombine.high %v3431_v33, %v3431_v33 }
 0x6dc   : > { %2824 = vmatprep.subr.msk.mxu0 %vm552_vm5, %v1405_v34  ;;  %v1602_v34 = vmul.f32 %v3345_v40, %v1601_v29 }
 0x6dd   : > { %2825 = vmatpush1.msk.msra.mxu0 %vm552_vm5, %v3431_v33 }
 0x6de   : > { %2826 = vmatmul.mubr.msk.f32.vlgmr.msra.gmra.mxu0 %vm539_vm6, %v3286_v54  ;;  %1717 = vmatprep.subr.mxu0 %v3379_v19 }
 0x6df   : > { %1718 = vmatpush1.msra.mxu0 %v3377_v18  ;;  %1480 = vmatprep.mubr.f32.mxu0 %v3060_v0 }
 0x6e0   : > { %1719 = vmatprep.subr.mxu0 %v3382_v21 }
 0x6e1   : > { %1720 = vmatpush1.msra.mxu0 %v3390_v23 }
 0x6e2   : > { %2827 = vmatmul.mubr.msk.f32.gmra.mxu0 %vm539_vm6, %v3298_v55 }
 0x6e3   : > { %1486 = vmatprep.mubr.f32.mxu0 %v3060_v0 }
 0x6e6   : > { %2828 = vmatmul.mubr.msk.f32.gmra.mxu0 %vm539_vm6, %v3307_v56 }
 0x6e7   : > { %1492 = vmatprep.mubr.f32.mxu0 %v3060_v0 }
 0x6ea   : > { %2829 = vmatmul.mubr.msk.f32.gmra.mxu0 %vm539_vm6, %v3315_v57 }
 0x6eb   : > { %1753 = vmatprep.mubr.f32.mxu0 %v3060_v0 }
 0x6ee   : > { %2835 = vmatmul.mubr.msk.f32.vlgmr.msra.gmra.mxu0 %vm1040_vm8, %v3330_v38 }
 0x6ef   : > { %1759 = vmatprep.mubr.f32.mxu0 %v3060_v0 }
 0x6f2   : > { %2836 = vmatmul.mubr.msk.f32.gmra.mxu0 %vm1040_vm8, %v3337_v39 }
 0x6f3   : > { %2031 = vmatprep.mubr.f32.mxu0 %v3060_v0 }
 0x79e   : > { %v1476_v18 = vpop.f32.mrf.mxu0 }
 0x79f   : > { %v1515_v24 = vmul.f32 %v1507_v8, %v1476_v18  ;;  %v1599_v18 = vstv %s2815_s15 }
 0x7a0   : > { %v1478_v19 = vpop.f32.mrf.mxu0 }
 0x7a1   : > { %v1516_v14 = vmul.f32 %v1508_v5, %v1478_v19  ;;  %v1603_v19 = vsub.f32 %v3398_v41, %v3205_v10  ;;  %v1848_v5 = vstv %s2814_s16 }
 0x7a2   : > { %v1482_v21 = vpop.f32.mrf.mxu0 }
 0x7a3   : > { %v1517_v11 = vmul.f32 %v1509_v3, %v1482_v21 }
 0x7a4   : > { %v1484_v23 = vpop.f32.mrf.mxu0 }
 0x7a5   : > { %v1518_v7 = vmul.f32 %v1510_v2, %v1484_v23 }
 0x7a6   : > { %v1488_v35 = vpop.f32.mrf.mxu0 }
 0x7a7   : > { %v1519_v28 = vmul.f32 %v1511_v63, %v1488_v35  ;;  %v1604_v35 = vmul.f32 %v1603_v19, %v1602_v34 }
 0x7a8   : > { %v1490_v42 = vpop.f32.mrf.mxu0 }
 0x7a9   : > { %v1520_v27 = vmul.f32 %v1512_v60, %v1490_v42 }
 0x7aa   : > { %v1494_v48 = vpop.f32.mrf.mxu0 }
 0x7ab   : > { %v1521_v1 = vmul.f32 %v1513_v53, %v1494_v48 }
 0x7ac   : > { %v1496_v58 = vpop.f32.mrf.mxu0 }
 0x7ad   : > { %v1522_v61 = vmul.f32 %v1514_v50, %v1496_v58 }
 0x7ae   : > { %v1755_v43 = vpop.f32.mrf.mxu0 }
 0x7af   : > { %1547 = vmatprep.subr.mxu1 %v1522_v61 }
 0x7b0   : > { %1548 = vmatpush1.msra.mxu1 %v1521_v1 }
 0x7b1   : > { %1549 = vmatprep.subr.mxu1 %v1520_v27 }
 0x7b2   : > { %1550 = vmatpush1.msra.mxu1 %v1519_v28 }
 0x7b3   : > { %1551 = vmatprep.subr.mxu1 %v1518_v7  ;;  %v1845_v7 = vstv %s2813_s17 }
 0x7b4   : > { %1552 = vmatpush1.msra.mxu1 %v1517_v11 }
 0x7b5   : > { %1553 = vmatprep.subr.mxu1 %v1516_v14 }
 0x7b6   : > { %1554 = vmatpush1.msra.mxu1 %v1515_v24 }
 0x7b7   : > { %2830 = vmatmul.mubr.msk.f32.vlgmr.msra.gmra.mxu1 %vm654_vm7, %v3322_v37 }
 0x7b8   : > { %1676 = vmatprep.mubr.f32.mxu1 %v3060_v0 }
 0x877   : > { %v1589_v26 = vpop.f32.mrf.mxu1 }
 0x879   : > { %v1591_v30 = vpop.f32.mrf.mxu1 }
 0x87a   : > { %v1596_v31 = vcombine.low %v1589_v26, %v1591_v30 }
 0x87c   : > { %v1598_v21 = vsub.f32 %v3431_v33, %v1596_v31  ;;  %v1757_v33 = vpop.f32.mrf.mxu0 }
 0x87e   : > { %v1600_v23 = vmul.f32 %v1599_v18, %v1598_v21  ;;  %v1761_v48 = vpop.f32.mrf.mxu0 }
 0x880   : > { %v1605_v36 = vadd.f32 %v1604_v35, %v1600_v23  ;;  %v1763_v58 = vpop.f32.mrf.mxu0 }
 0x882   : > { %v1607_v42 = vcombine.high %v1605_v36, %v1605_v36  ;;  %v1849_v8 = vmul.f32 %v1848_v5, %v1605_v36 }
 0x884   : > { %2831 = vmatprep.subr.msk.mxu1 %vm552_vm5, %v1607_v42  ;;  %v1851_v29 = vcombine.high %v1849_v8, %v1849_v8 }
 0x885   : > { %2832 = vmatpush1.msk.msra.mxu1 %vm552_vm5, %v1605_v36 }
 0x886   : > { %2833 = vmatmul.mubr.msk.f32.vlgmr.msra.gmra.mxu1 %vm539_vm6, %v3354_v9 }
 0x887   : > { %1682 = vmatprep.mubr.f32.mxu1 %v3060_v0 }
 0x88a   : > { %2834 = vmatmul.mubr.msk.f32.gmra.mxu1 %vm539_vm6, %v3364_v52 }
 0x88b   : > { %1838 = vmatprep.mubr.f32.mxu1 %v3060_v0 }
 0x946   : > { %v1678_v45 = vpop.f32.mrf.mxu1 }
 0x947   : > { %v1756_v53 = vadd.f32 %v1755_v43, %v1678_v45 }
 0x948   : > { %v1680_v46 = vpop.f32.mrf.mxu1 }
 0x949   : > { %v1758_v50 = vadd.f32 %v1757_v33, %v1680_v46  ;;  %v1766_v1 = vadd.f32 %v1756_v53, %v3371_v6 }
 0x94a   : > { %v1684_v49 = vpop.f32.mrf.mxu1 }
 0x94b   : > { %v1762_v51 = vadd.f32 %v1761_v48, %v1684_v49  ;;  %v1767_v62 = vadd.f32 %v1758_v50, %v3371_v6 }
 0x94c   : > { %v1686_v59 = vpop.f32.mrf.mxu1 }
 0x94d   : > { %v1764_v60 = vadd.f32 %v1763_v58, %v1686_v59  ;;  %v1768_v61 = vadd.f32 %v1762_v51, %v3369_v4 }
 0x94f   : > { %v1769_v63 = vadd.f32 %v1764_v60, %v3369_v4 }
 0x951   : > { %2963 = vtanh.f32 %v1769_v63 }
 0x952   : > { %2965 = vtanh.f32 %v1768_v61 }
 0x953   : > { %2967 = vtanh.f32 %v1767_v62 }
 0x954   : > { %2969 = vtanh.f32 %v1766_v1 }
 0x95e   : > { %v3479_v2 = vpop.eup %2963 }
 0x95f   : > { %v3481_v27 = vpop.eup %2965  ;;  %1802 = vmatprep.subr.mxu1 %v3479_v2 }
 0x960   : > { %v3484_v3 = vpop.eup %2967  ;;  %1803 = vmatpush1.msra.mxu1 %v3481_v27 }
 0x961   : > { %v3487_v28 = vpop.eup %2969  ;;  %1804 = vmatprep.subr.mxu1 %v3484_v3 }
 0x962   : > { %1805 = vmatpush1.msra.mxu1 %v3487_v28 }
 0x963   : > { %2837 = vmatmul.mubr.msk.f32.vlgmr.msra.gmra.mxu1 %vm1040_vm8, %v3388_v22 }
 0x964   : > { %1934 = vmatprep.mubr.f32.mxu1 %v3060_v0 }
 0xa23   : > { %v1840_v11 = vpop.f32.mrf.mxu1 }
 0xa24   : > { %v1846_v14 = vmul.f32 %v1845_v7, %v1840_v11 }
 0xa25   : > { %v1842_v24 = vpop.f32.mrf.mxu1 }
 0xa26   : > { %v1847_v26 = vmul.f32 %v1845_v7, %v1842_v24  ;;  %v1853_v30 = vadd.f32 %v1849_v8, %v1846_v14 }
 0xa28   : > { %v1854_v31 = vadd.f32 %v1851_v29, %v1847_v26 }
 0xa2a   : > { %v1857_v34 = vcombine.low %v1853_v30, %v1854_v31 }
 0xa2c   : > { %v3495_v19 = vsub.f32 %v3398_v41, %v1857_v34 }
 0xa2e   : > { %v1865_v18 = vcombine.high %v3495_v19, %v3495_v19 }
 0xa30   : > { %2842 = vmatprep.subr.msk.mxu1 %vm552_vm5, %v1865_v18 }
 0xa31   : > { %2843 = vmatpush1.msk.msra.mxu1 %vm552_vm5, %v3495_v19 }
 0xa32   : > { %2844 = vmatmul.mubr.msk.f32.vlgmr.msra.gmra.mxu1 %vm539_vm6, %v3217_v13 }
 0xa33   : > { %1940 = vmatprep.mubr.f32.mxu1 %v3060_v0 }
 0xa36   : > { %2845 = vmatmul.mubr.msk.f32.gmra.mxu1 %vm539_vm6, %v3242_v16 }
 0xa37   : > { %1946 = vmatprep.mubr.f32.mxu1 %v3060_v0 }
 0xa3a   : > { %2846 = vmatmul.mubr.msk.f32.gmra.mxu1 %vm539_vm6, %v3212_v12 }
 0xa3b   : > { %1952 = vmatprep.mubr.f32.mxu1 %v3060_v0 }
 0xa3e   : > { %2847 = vmatmul.mubr.msk.f32.gmra.mxu1 %vm539_vm6, %v3236_v15 }
 0xa3f   : > { %2226 = vmatprep.mubr.f32.mxu1 %v3060_v0 }
 0xaf2   : > { %v1936_v41 = vpop.f32.mrf.mxu1 }
 0xaf3   : > { %v1937_v49 = vadd.f32 %v1936_v41, %v3260_v32 }
 0xaf4   : > { %v1938_v21 = vpop.f32.mrf.mxu1 }
 0xaf5   : > { %v1939_v48 = vadd.f32 %v1938_v21, %v3260_v32 }
 0xaf6   : > { %v1942_v13 = vpop.f32.mrf.mxu1 }
 0xaf7   : > { %v1943_v46 = vadd.f32 %v1942_v13, %v3252_v20 }
 0xaf8   : > { %v1944_v23 = vpop.f32.mrf.mxu1 }
 0xaf9   : > { %v1945_v15 = vadd.f32 %v1944_v23, %v3252_v20 }
 0xafa   : > { %v1948_v35 = vpop.f32.mrf.mxu1 }
 0xafb   : > { %v1949_v45 = vadd.f32 %v1948_v35, %v3254_v25 }
 0xafc   : > { %v1950_v36 = vpop.f32.mrf.mxu1 }
 0xafd   : > { %v1951_v33 = vadd.f32 %v1950_v36, %v3254_v25 }
 0xafe   : > { %v1954_v42 = vpop.f32.mrf.mxu1 }
 0xaff   : > { %v1955_v16 = vadd.f32 %v1954_v42, %v3250_v17 }
 0xb00   : > { %v1956_v43 = vpop.f32.mrf.mxu1 }
 0xb01   : > { %v1957_v12 = vadd.f32 %v1956_v43, %v3250_v17 }
 0xb03   : > { %2971 = vtanh.f32 %v1957_v12 }
 0xb04   : > { %2973 = vtanh.f32 %v1955_v16 }
 0xb05   : > { %2975 = vtanh.f32 %v1951_v33 }
 0xb06   : > { %2977 = vtanh.f32 %v1949_v45 }
 0xb07   : > { %2979 = vtanh.f32 %v1945_v15 }
 0xb08   : > { %2981 = vtanh.f32 %v1943_v46 }
 0xb09   : > { %2983 = vtanh.f32 %v1939_v48 }
 0xb0a   : > { %2985 = vtanh.f32 %v1937_v49  ;;  %v2240_v49 = vstv %s2841_s18 }
 0xb10   : > { %v2972_v50 = vpop.eup %2971 }
 0xb11   : > { %v2974_v51 = vpop.eup %2973  ;;  %1991 = vmatprep.subr.mxu0 %v2972_v50 }
 0xb12   : > { %v2976_v53 = vpop.eup %2975  ;;  %1992 = vmatpush1.msra.mxu0 %v2974_v51 }
 0xb13   : > { %v2978_v58 = vpop.eup %2977  ;;  %1993 = vmatprep.subr.mxu0 %v2976_v53 }
 0xb14   : > { %v2980_v59 = vpop.eup %2979  ;;  %1994 = vmatpush1.msra.mxu0 %v2978_v58  ;;  %v2142_v24 = vmul.f32 %v2978_v58, %v2978_v58  ;;  %v2242_v58 = vsub.f32 %v3495_v19, %v3205_v10 }
 0xb15   : > { %v2982_v60 = vpop.eup %2981  ;;  %1995 = vmatprep.subr.mxu0 %v2980_v59  ;;  %v2141_v29 = vmul.f32 %v2980_v59, %v2980_v59  ;;  %v2238_v59 = vstv %s2840_s20 }
 0xb16   : > { %v2984_v61 = vpop.eup %2983  ;;  %1996 = vmatpush1.msra.mxu0 %v2982_v60  ;;  %v2140_v30 = vmul.f32 %v2982_v60, %v2982_v60  ;;  %v2150_v13 = vsub.f32 1.0, %v2142_v24 }
 0xb17   : > { %v2986_v62 = vpop.eup %2985  ;;  %1997 = vmatprep.subr.mxu0 %v2984_v61  ;;  %v2139_v18 = vmul.f32 %v2984_v61, %v2984_v61  ;;  %v2149_v35 = vsub.f32 1.0, %v2141_v29 }
 0xb18   : > { %1998 = vmatpush1.msra.mxu0 %v2986_v62  ;;  %v2138_v21 = vmul.f32 %v2986_v62, %v2986_v62  ;;  %v2148_v42 = vsub.f32 1.0, %v2140_v30 }
 0xb19   : > { %2848 = vmatmul.mubr.msk.f32.vlgmr.msra.gmra.mxu0 %vm654_vm7, %v3269_v44  ;;  %v2147_v43 = vsub.f32 1.0, %v2139_v18 }
 0xb1a   : > { %2113 = vmatprep.mubr.f32.mxu0 %v3060_v0  ;;  %v2146_v12 = vsub.f32 1.0, %v2138_v21 }
 0xbd9   : > { %v2033_v63 = vpop.f32.mrf.mxu0 }
 0xbda   : > { %v2034_v5 = vadd.f32 %v2033_v63, %v3274_v47 }
 0xbdb   : > { %v2035_v1 = vpop.f32.mrf.mxu0 }
 0xbdc   : > { %v2036_v7 = vadd.f32 %v2035_v1, %v3274_v47 }
 0xbde   : > { %v2040_v8 = vcombine.low %v2034_v5, %v2036_v7 }
 0xbe0   : > { %v3528_v11 = vsub.f32 %v3495_v19, %v2040_v8 }
 0xbe2   : > { %v2044_v14 = vcombine.high %v3528_v11, %v3528_v11 }
 0xbe4   : > { %2849 = vmatprep.subr.msk.mxu0 %vm552_vm5, %v2044_v14 }
 0xbe5   : > { %2850 = vmatpush1.msk.msra.mxu0 %vm552_vm5, %v3528_v11 }
 0xbe6   : > { %2851 = vmatmul.mubr.msk.f32.vlgmr.msra.gmra.mxu0 %vm539_vm6, %v3286_v54  ;;  %2356 = vmatprep.subr.mxu0 %v3479_v2 }
 0xbe7   : > { %2357 = vmatpush1.msra.mxu0 %v3481_v27  ;;  %2119 = vmatprep.mubr.f32.mxu0 %v3060_v0  ;;  %v2145_v27 = vmul.f32 %v2972_v50, %v2972_v50 }
 0xbe8   : > { %2358 = vmatprep.subr.mxu0 %v3484_v3 }
 0xbe9   : > { %2359 = vmatpush1.msra.mxu0 %v3487_v28  ;;  %v2143_v28 = vmul.f32 %v2976_v53, %v2976_v53  ;;  %v2241_v53 = vmul.f32 %v3345_v40, %v2240_v49 }
 0xbea   : > { %2852 = vmatmul.mubr.msk.f32.gmra.mxu0 %vm539_vm6, %v3298_v55 }
 0xbeb   : > { %2125 = vmatprep.mubr.f32.mxu0 %v3060_v0  ;;  %v2243_v62 = vmul.f32 %v2242_v58, %v2241_v53 }
 0xbee   : > { %2853 = vmatmul.mubr.msk.f32.gmra.mxu0 %vm539_vm6, %v3307_v56 }
 0xbef   : > { %2131 = vmatprep.mubr.f32.mxu0 %v3060_v0 }
 0xbf2   : > { %2854 = vmatmul.mubr.msk.f32.gmra.mxu0 %vm539_vm6, %v3315_v57  ;;  %v2144_v57 = vmul.f32 %v2974_v51, %v2974_v51 }
 0xbf3   : > { %2392 = vmatprep.mubr.f32.mxu0 %v3060_v0 }
 0xbf4   : > { %v2152_v31 = vsub.f32 1.0, %v2144_v57 }
 0xbf6   : > { %2860 = vmatmul.mubr.msk.f32.vlgmr.msra.gmra.mxu0 %vm1040_vm8, %v3330_v38  ;;  %v2153_v38 = vsub.f32 1.0, %v2145_v27 }
 0xbf7   : > { %2398 = vmatprep.mubr.f32.mxu0 %v3060_v0 }
 0xbfa   : > { %2861 = vmatmul.mubr.msk.f32.gmra.mxu0 %vm1040_vm8, %v3337_v39  ;;  %v2151_v39 = vsub.f32 1.0, %v2143_v28 }
 0xbfb   : > { %2569 = vmatprep.mubr.f32.mxu0 %v3060_v0 }
 0xca6   : > { %v2115_v44 = vpop.f32.mrf.mxu0 }
 0xca7   : > { %v2154_v46 = vmul.f32 %v2146_v12, %v2115_v44 }
 0xca8   : > { %v2117_v54 = vpop.f32.mrf.mxu0 }
 0xca9   : > { %v2155_v15 = vmul.f32 %v2147_v43, %v2117_v54 }
 0xcaa   : > { %v2121_v55 = vpop.f32.mrf.mxu0 }
 0xcab   : > { %v2156_v45 = vmul.f32 %v2148_v42, %v2121_v55 }
 0xcac   : > { %v2123_v56 = vpop.f32.mrf.mxu0 }
 0xcad   : > { %v2157_v33 = vmul.f32 %v2149_v35, %v2123_v56  ;;  %v3014_v35 = vld [vmem:[%s3631_s2 + $0x18] sm:$0xff] }
 0xcae   : > { %v2127_v2 = vpop.f32.mrf.mxu0 }
 0xcaf   : > { %v2158_v16 = vmul.f32 %v2150_v13, %v2127_v2 }
 0xcb0   : > { %v2129_v3 = vpop.f32.mrf.mxu0 }
 0xcb1   : > { %v2159_v36 = vmul.f32 %v2151_v39, %v2129_v3 }
 0xcb2   : > { %v2133_v26 = vpop.f32.mrf.mxu0 }
 0xcb3   : > { %v2160_v23 = vmul.f32 %v2152_v31, %v2133_v26 }
 0xcb4   : > { %v2135_v34 = vpop.f32.mrf.mxu0 }
 0xcb5   : > { %v2161_v41 = vmul.f32 %v2153_v38, %v2135_v34 }
 0xcb6   : > { %v2394_v10 = vpop.f32.mrf.mxu0 }
 0xcb7   : > { %2186 = vmatprep.subr.mxu1 %v2161_v41 }
 0xcb8   : > { %2187 = vmatpush1.msra.mxu1 %v2160_v23  ;;  %v2396_v40 = vpop.f32.mrf.mxu0  ;;  %v3012_v23 = vld [vmem:[%s3631_s2 + $0x8] sm:$0xff] }
 0xcb9   : > { %2188 = vmatprep.subr.mxu1 %v2159_v36 }
 0xcba   : > { %2189 = vmatpush1.msra.mxu1 %v2158_v16  ;;  %v2400_v7 = vpop.f32.mrf.mxu0 }
 0xcbb   : > { %2190 = vmatprep.subr.mxu1 %v2157_v33 }
 0xcbc   : > { %2191 = vmatpush1.msra.mxu1 %v2156_v45  ;;  %v2402_v55 = vpop.f32.mrf.mxu0 }
 0xcbd   : > { %2192 = vmatprep.subr.mxu1 %v2155_v15 }
 0xcbe   : > { %2193 = vmatpush1.msra.mxu1 %v2154_v46 }
 0xcbf   : > { %2855 = vmatmul.mubr.msk.f32.vlgmr.msra.gmra.mxu1 %vm654_vm7, %v3322_v37 }
 0xcc0   : > { %2315 = vmatprep.mubr.f32.mxu1 %v3060_v0 }
 0xd7f   : > { %v2228_v48 = vpop.f32.mrf.mxu1 }
 0xd81   : > { %v2230_v50 = vpop.f32.mrf.mxu1 }
 0xd82   : > { %v2235_v51 = vcombine.low %v2228_v48, %v2230_v50 }
 0xd84   : > { %v2237_v60 = vsub.f32 %v3528_v11, %v2235_v51 }
 0xd86   : > { %v2239_v61 = vmul.f32 %v2238_v59, %v2237_v60 }
 0xd88   : > { %v2244_v63 = vadd.f32 %v2243_v62, %v2239_v61 }
 0xd8a   : > { %v2246_v37 = vcombine.high %v2244_v63, %v2244_v63 }
 0xd8c   : > { %2856 = vmatprep.subr.msk.mxu1 %vm552_vm5, %v2246_v37 }
 0xd8d   : > { %2857 = vmatpush1.msk.msra.mxu1 %vm552_vm5, %v2244_v63 }
 0xd8e   : > { %2858 = vmatmul.mubr.msk.f32.vlgmr.msra.gmra.mxu1 %vm539_vm6, %v3354_v9 }
 0xd8f   : > { %2321 = vmatprep.mubr.f32.mxu1 %v3060_v0 }
 0xd92   : > { %2859 = vmatmul.mubr.msk.f32.gmra.mxu1 %vm539_vm6, %v3364_v52 }
 0xd93   : > { %2477 = vmatprep.mubr.f32.mxu1 %v3060_v0 }
 0xe4e   : > { %v2317_v1 = vpop.f32.mrf.mxu1 }
 0xe4f   : > { %v2395_v44 = vadd.f32 %v2394_v10, %v2317_v1 }
 0xe50   : > { %v2319_v5 = vpop.f32.mrf.mxu1 }
 0xe51   : > { %v2397_v11 = vadd.f32 %v2396_v40, %v2319_v5  ;;  %v2405_v27 = vadd.f32 %v2395_v44, %v3371_v6 }
 0xe52   : > { %v2323_v8 = vpop.f32.mrf.mxu1 }
 0xe53   : > { %v2401_v14 = vadd.f32 %v2400_v7, %v2323_v8  ;;  %v2406_v2 = vadd.f32 %v2397_v11, %v3371_v6  ;;  %v2484_v6 = vstv %s2838_s26  ;;  %s465_s26 = scalar_lea.vmem %s3641_s12, %s2872_s19 }
 0xe54   : > { %v2325_v54 = vpop.f32.mrf.mxu1 }
 0xe55   : > { %v2403_v56 = vadd.f32 %v2402_v55, %v2325_v54  ;;  %v2407_v9 = vadd.f32 %v2401_v14, %v3369_v4 }
 0xe57   : > { %v2408_v52 = vadd.f32 %v2403_v56, %v3369_v4  ;;  %v2487_v4 = vstv %s2839_s24 }
 0xe58   : > { %v2488_v26 = vmul.f32 %v2487_v4, %v2244_v63  ;;  %v3015_v63 = vld [vmem:[%s3633_s4] sm:$0xf] }
 0xe59   : > { %2987 = vtanh.f32 %v2408_v52 }
 0xe5a   : > { %2989 = vtanh.f32 %v2407_v9  ;;  %v2490_v34 = vcombine.high %v2488_v26, %v2488_v26 }
 0xe5b   : > { %2991 = vtanh.f32 %v2406_v2 }
 0xe5c   : > { %2993 = vtanh.f32 %v2405_v27 }
 0xe66   : > { %v2988_v3 = vpop.eup %2987 }
 0xe67   : > { %v2990_v57 = vpop.eup %2989  ;;  %2441 = vmatprep.subr.mxu1 %v2988_v3 }
 0xe68   : > { %v2992_v28 = vpop.eup %2991  ;;  %2442 = vmatpush1.msra.mxu1 %v2990_v57 }
 0xe69   : > { %v2994_v24 = vpop.eup %2993  ;;  %2443 = vmatprep.subr.mxu1 %v2992_v28 }
 0xe6a   : > { %2444 = vmatpush1.msra.mxu1 %v2994_v24 }
 0xe6b   : > { %2862 = vmatmul.mubr.msk.f32.vlgmr.msra.gmra.mxu1 %vm1040_vm8, %v3388_v22  ;;  %v3011_v22 = vld [vmem:[%s3631_s2] sm:$0xff] }
 0xe6c   : > { %2666 = vmatprep.mubr.f32.mxu1 %v3060_v0 }
 0xf2b   : > { %v2479_v29 = vpop.f32.mrf.mxu1 }
 0xf2c   : > { %v2485_v38 = vmul.f32 %v2484_v6, %v2479_v29 }
 0xf2d   : > { %v2481_v30 = vpop.f32.mrf.mxu1 }
 0xf2e   : > { %v2486_v31 = vmul.f32 %v2484_v6, %v2481_v30  ;;  %v2492_v18 = vadd.f32 %v2488_v26, %v2485_v38 }
 0xf30   : > { %v2493_v39 = vadd.f32 %v2490_v34, %v2486_v31 }
 0xf32   : > { %v2496_v41 = vcombine.low %v2492_v18, %v2493_v39 }
 0xf34   : > { %v2498_v21 = vsub.f32 %v3495_v19, %v2496_v41  ;;  %v3013_v19 = vld [vmem:[%s3631_s2 + $0x10] sm:$0xff] }
 0xf36   : > { %v2500_v13 = vcombine.high %v2498_v21, %v2498_v21 }
 0xf38   : > { %2863 = vmatprep.subr.msk.mxu0 %vm552_vm5, %v2500_v13 }
 0xf39   : > { %2864 = vmatpush1.msk.msra.mxu0 %vm552_vm5, %v2498_v21 }
 0xf3a   : > { %2865 = vmatmul.mubr.msk.f32.vlgmr.msra.gmra.mxu0 %vm539_vm6, %v3011_v22 }
 0xf3b   : > { %2575 = vmatprep.mubr.f32.mxu0 %v3060_v0 }
 0xf3e   : > { %2866 = vmatmul.mubr.msk.f32.gmra.mxu0 %vm539_vm6, %v3012_v23 }
 0xf3f   : > { %2581 = vmatprep.mubr.f32.mxu0 %v3060_v0 }
 0xf42   : > { %2867 = vmatmul.mubr.msk.f32.gmra.mxu0 %vm539_vm6, %v3013_v19 }
 0xf43   : > { %2587 = vmatprep.mubr.f32.mxu0 %v3060_v0 }
 0xf46   : > { %2868 = vmatmul.mubr.msk.f32.gmra.mxu0 %vm539_vm6, %v3014_v35 }
 0xffa   : > { %v2571_v36 = vpop.f32.mrf.mxu0 }
 0xffb   : > { %v2572_v58 = vadd.f32 %v2571_v36, %v3260_v32 }
 0xffc   : > { %v2573_v42 = vpop.f32.mrf.mxu0 }
 0xffd   : > { %v2574_v53 = vadd.f32 %v2573_v42, %v3260_v32 }
 0xffe   : > { %v2577_v16 = vpop.f32.mrf.mxu0 }
 0xfff   : > { %v2578_v51 = vadd.f32 %v2577_v16, %v3252_v20 }
0x1000   : > { %v2579_v43 = vpop.f32.mrf.mxu0 }
0x1001   : > { %v2580_v50 = vadd.f32 %v2579_v43, %v3252_v20 }
0x1002   : > { %v2583_v33 = vpop.f32.mrf.mxu0 }
0x1003   : > { %v2584_v49 = vadd.f32 %v2583_v33, %v3254_v25 }
0x1004   : > { %v2585_v12 = vpop.f32.mrf.mxu0 }
0x1005   : > { %v2586_v48 = vadd.f32 %v2585_v12, %v3254_v25 }
0x1006   : > { %v2589_v45 = vpop.f32.mrf.mxu0 }
0x1007   : > { %v2590_v15 = vadd.f32 %v2589_v45, %v3250_v17 }
0x1008   : > { %v2591_v46 = vpop.f32.mrf.mxu0 }
0x1009   : > { %v2592_v0 = vadd.f32 %v2591_v46, %v3250_v17 }
0x100b   : > { %2995 = vtanh.f32 %v2592_v0 }
0x100c   : > { %2997 = vtanh.f32 %v2590_v15 }
0x100d   : > { %2999 = vtanh.f32 %v2586_v48 }
0x100e   : > { %3001 = vtanh.f32 %v2584_v49 }
0x100f   : > { %3003 = vtanh.f32 %v2580_v50 }
0x1010   : > { %3005 = vtanh.f32 %v2578_v51 }
0x1011   : > { %3007 = vtanh.f32 %v2574_v53 }
0x1012   : > { %3009 = vtanh.f32 %v2572_v58 }
0x1018   : > { %v2996_v59 = vpop.eup %2995 }
0x1019   : > { %v2998_v17 = vpop.eup %2997  ;;  %2626 = vmatprep.subr.mxu1 %v2996_v59 }
0x101a   : > { %v3000_v25 = vpop.eup %2999  ;;  %2627 = vmatpush1.msra.mxu1 %v2998_v17 }
0x101b   : > { %v3002_v60 = vpop.eup %3001  ;;  %2628 = vmatprep.subr.mxu1 %v3000_v25 }
0x101c   : > { %v3004_v20 = vpop.eup %3003  ;;  %2629 = vmatpush1.msra.mxu1 %v3002_v60 }
0x101d   : > { %v3006_v61 = vpop.eup %3005  ;;  %2630 = vmatprep.subr.mxu1 %v3004_v20 }
0x101e   : > { %v3008_v62 = vpop.eup %3007  ;;  %2631 = vmatpush1.msra.mxu1 %v3006_v61 }
0x101f   : > { %v3010_v32 = vpop.eup %3009  ;;  %2632 = vmatprep.subr.mxu1 %v3008_v62 }
0x1020   : > { %2633 = vmatpush1.msra.mxu1 %v3010_v32 }
0x1021   : > { %2869 = vmatmul.mubr.msk.f32.vlgmr.msra.gmra.mxu1 %vm654_vm7, %v3015_v63 }
0x10e1   : > { %v2668_v37 = vpop.f32.mrf.mxu1 }
0x10e2   : > { %v2669_v40 = vadd.f32 %v2668_v37, %v3274_v47 }
0x10e3   : > { %v2670_v10 = vpop.f32.mrf.mxu1 }
0x10e4   : > { %v2671_v1 = vadd.f32 %v2670_v10, %v3274_v47 }
0x10e6   : > { %v2675_v5 = vcombine.low %v2669_v40, %v2671_v1 }
0x10e8   : > { %2677 = vst [vmem:[%s465_s26] sm:$0xff] %v2675_v5 }
0x10e9 PF: > { %s23_s23 = sadd.s32 1, %s3057_s23   ;;  %s3646_s21 = smov %s3053_s22 }
0x10ea   : > { %p20_p2 = scmp.ge.s32.totalorder %s23_s23, 4   ;;  %s3647_s22 = smov %s3649_s25 }
0x10ec   :  { %22 = sbr.rel (!%p20_p2) target bundleno = 2 (0x2), region = 103 }
0x10f1   :  { %2708 = vsyncpa [#allocation3], 1 }
0x10f2   :  { %2710 = vsyncpa [#allocation3 + $0x1], 1 }

</bundles_post_ra>
